<compile_context>
chip_gen: v6e
topology: v6e:2x2x1
jax: 0.10.0
libtpu: 0.0.40
codegen_flags: <defaults>
</compile_context>

<pallas_src>
import functools

import jax
import jax.numpy as jnp
from jax.experimental import pallas as pl
from jax.experimental.pallas import tpu as pltpu

_LANE = 128      # TPU lane width; gate width (4H) and head widths pad to this
_LN_EPS = 1e-5   # nn.LayerNorm default


# ----------------------------------------------------------------------------
# Fused kernel: all LSTM+LN layers + MLP head in one pallas_call.
# ----------------------------------------------------------------------------
def _fused_stock_lstm_kernel(*refs, num_layers, hidden, seq_len, batch):
    """refs layout (no grid, no scratch):
        refs[0]                       x, time-major (T*B, D_in), bf16
        refs[1 + 5*l + 0..4]          layer l: wih (D_l,4H) bf16, whh (H,4H) bf16,
                                      bias (1,4H) f32, gamma (1,H) f32, beta (1,H) f32
                                      (g-gate columns of wih/whh/bias pre-scaled by 2)
        refs[1 + 5*L .. 4 + 5*L]      head: w1 (H,128) bf16, b1 (1,128) f32,
                                      w2 (128,128) bf16, b2 (1,128) f32
        refs[-1]                      out (B, 128) f32
    """
    H, T, B, L = hidden, seq_len, batch, num_layers
    x_ref = refs[0]
    layer_refs = refs[1:1 + 5 * L]
    w1_ref, b1_ref, w2_ref, b2_ref = refs[1 + 5 * L:5 + 5 * L]
    out_ref = refs[-1]

    # g-gate lane mask, hoisted out of all loops (broadcasts are not CSE'd).
    lane = jax.lax.broadcasted_iota(jnp.int32, (B, 4 * H), 1)
    g_mask = (lane >= 2 * H) & (lane < 3 * H)

    # Small per-layer params stay resident in vregs for the whole kernel.
    wih = [layer_refs[5 * l + 0][...] for l in range(L)]
    whh = [layer_refs[5 * l + 1][...] for l in range(L)]
    bias = [layer_refs[5 * l + 2][...] for l in range(L)]
    gamma = [layer_refs[5 * l + 3][...] for l in range(L)]
    beta = [layer_refs[5 * l + 4][...] for l in range(L)]

    # Layer-0 input projection hoisted out of the recurrence: ONE
    # (T*B, D) @ (D, 4H) bf16 matmul (f32 accumulate) for all timesteps.
    gates_x0 = jnp.dot(x_ref[...], wih[0],
                       preferred_element_type=jnp.float32) + bias[0]

    h = [jnp.zeros((B, H), jnp.float32) for _ in range(L)]
    c = [jnp.zeros((B, H), jnp.float32) for _ in range(L)]
    y = [None] * L      # LN output of layer l at its current wavefront time
    y_out = None        # LN output of the last layer at t = T-1 (feeds the head)

    def cell(l, gates):
        """One LSTM cell update from pre-activation gates (B, 4H) f32."""
        # ONE full-width sigmoid EUP push; tanh(z) = 2*sigmoid(2z) - 1 on the
        # g lanes (their weight/bias columns were pre-scaled by 2 at init).
        sig = jax.nn.sigmoid(gates)
        act = jnp.where(g_mask, 2.0 * sig - 1.0, sig)      # [ i | f | g | o ]
        # i*g via a direction-invariant 2H lane rotation (XLU slot): lane
        # group 0 (i) pairs with lane group 2 (g); read at lane offset 0.
        ig = (act * pltpu.roll(act, 2 * H, axis=1))[:, :H]
        f_g = act[:, H:2 * H]
        o_g = act[:, 3 * H:4 * H]
        c_new = f_g * c[l] + ig
        h_new = o_g * jnp.tanh(c_new)
        return h_new, c_new

    def layernorm(l, v):
        # One-pass LN: the two cross-lane reductions are independent.
        mu = jnp.mean(v, axis=-1, keepdims=True)
        ms = jnp.mean(v * v, axis=-1, keepdims=True)
        inv = jax.lax.rsqrt(ms - mu * mu + _LN_EPS)
        return (v - mu) * inv * gamma[l] + beta[l]

    # Wavefront over (layer, time): at wave step s, layer l works on t = s - l,
    # so the L per-layer dependence chains within one wave step are mutually
    # independent (ILP for the scheduler).  Layers are visited high-to-low so
    # layer l reads y[l-1] produced at the PREVIOUS wave step before layer l-1
    # overwrites it.
    for s in range(T + L - 1):
        for l in reversed(range(L)):
            t = s - l
            if t < 0 or t >= T:
                continue
            if l == 0:
                gates = gates_x0[t * B:(t + 1) * B, :] + jnp.dot(
                    h[0].astype(jnp.bfloat16), whh[0],
                    preferred_element_type=jnp.float32)
            else:
                gates = (jnp.dot(y[l - 1].astype(jnp.bfloat16), wih[l],
                                 preferred_element_type=jnp.float32)
                         + jnp.dot(h[l].astype(jnp.bfloat16), whh[l],
                                   preferred_element_type=jnp.float32)
                         + bias[l])
            h[l], c[l] = cell(l, gates)
            if l < L - 1:
                y[l] = layernorm(l, h[l])     # feeds layer l+1 next wave step
            elif t == T - 1:
                y_out = layernorm(l, h[l])    # only timestep the head consumes

    # fc1 -> ReLU -> fc2 on the last timestep (lane-dense zero-padded widths;
    # padded fc1 lanes are relu(0)=0 and feed zero rows of fc2).
    hfc = jnp.dot(y_out.astype(jnp.bfloat16), w1_ref[...],
                  preferred_element_type=jnp.float32) + b1_ref[...]
    hfc = jnp.maximum(hfc, 0.0)
    out_ref[...] = jnp.dot(hfc.astype(jnp.bfloat16), w2_ref[...],
                           preferred_element_type=jnp.float32) + b2_ref[...]


# ----------------------------------------------------------------------------
# Forward wrapper: per-call work is x layout only (pad batch, time-major, bf16)
# ----------------------------------------------------------------------------
@functools.partial(jax.jit, static_argnums=(2, 3, 4))
def stock_price_lstm_forward(kparams, x, hidden_size, num_layers, output_size):
    B, T, D = x.shape
    H = hidden_size
    assert (4 * H) % _LANE == 0, "gate width must be lane-dense (4H % 128 == 0)"

    # Pad batch to a full sublane group and go time-major (T*B, D).  Padded
    # rows are zeros; they pass through LN as rsqrt(~eps) -> finite values and
    # are sliced off below (benign).
    B_pad = max(8, ((B + 7) // 8) * 8)
    x_p = jnp.pad(x, ((0, B_pad - B), (0, 0), (0, 0)))
    x_tm = jnp.transpose(x_p, (1, 0, 2)).reshape(T * B_pad, D).astype(jnp.bfloat16)

    args = [x_tm]
    for lp in kparams["layers"]:
        args += [lp["wih"], lp["whh"], lp["bias"], lp["gamma"], lp["beta"]]
    hd = kparams["head"]
    args += [hd["w1"], hd["b1"], hd["w2"], hd["b2"]]

    kernel = functools.partial(
        _fused_stock_lstm_kernel,
        num_layers=num_layers, hidden=H, seq_len=T, batch=B_pad)

    out_pad = pl.pallas_call(
        kernel,
        out_shape=jax.ShapeDtypeStruct((B_pad, _LANE), jnp.float32),
        in_specs=[pl.BlockSpec(memory_space=pltpu.MemorySpace.VMEM)] * len(args),
        out_specs=pl.BlockSpec(memory_space=pltpu.MemorySpace.VMEM),
        # Gridless on purpose: footprint << 1 MiB (fine even for v7x's 64 MiB
        # VMEM).  TODO(synk): add a leading batch grid axis with
        # dimension_semantics=("parallel",) once B_pad >= 16 (v7x megacore).
    )(*args)

    return out_pad[:B, :output_size]


# ----------------------------------------------------------------------------
# Parameter construction (mirrors PyTorch module __init__ shapes / defaults)
# ----------------------------------------------------------------------------
def init_params(key, input_size, hidden_size, num_layers, output_size):
    params = {"lstm": [], "ln": []}
    d_in = input_size
    k = key
    bound = 1.0 / jnp.sqrt(hidden_size)
    for _ in range(num_layers):
        k, k1, k2, k3, k4 = jax.random.split(k, 5)
        w_ih = jax.random.uniform(k1, (4 * hidden_size, d_in),
                                  minval=-bound, maxval=bound, dtype=jnp.float32)
        w_hh = jax.random.uniform(k2, (4 * hidden_size, hidden_size),
                                  minval=-bound, maxval=bound, dtype=jnp.float32)
        b_ih = jax.random.uniform(k3, (4 * hidden_size,),
                                  minval=-bound, maxval=bound, dtype=jnp.float32)
        b_hh = jax.random.uniform(k4, (4 * hidden_size,),
                                  minval=-bound, maxval=bound, dtype=jnp.float32)
        params["lstm"].append({
            "wih_t": w_ih.T,                                  # (d_in, 4H)
            "whh_t": w_hh.T,                                  # (H, 4H)
            "bias": (b_ih + b_hh).reshape(1, 4 * hidden_size),
        })
        params["ln"].append({
            "gamma": jnp.ones((1, hidden_size), jnp.float32),
            "beta": jnp.zeros((1, hidden_size), jnp.float32),
        })
        d_in = hidden_size

    k, k1, k2, k3, k4 = jax.random.split(k, 5)
    b1_bound = 1.0 / jnp.sqrt(hidden_size)
    w1 = jax.random.uniform(k1, (25, hidden_size),
                            minval=-b1_bound, maxval=b1_bound, dtype=jnp.float32)
    b1 = jax.random.uniform(k2, (25,),
                            minval=-b1_bound, maxval=b1_bound, dtype=jnp.float32)
    b2_bound = 1.0 / jnp.sqrt(25.0)
    w2 = jax.random.uniform(k3, (output_size, 25),
                            minval=-b2_bound, maxval=b2_bound, dtype=jnp.float32)
    b2 = jax.random.uniform(k4, (output_size,),
                            minval=-b2_bound, maxval=b2_bound, dtype=jnp.float32)
    params["head"] = {
        "w1_t": w1.T, "b1": b1.reshape(1, 25),
        "w2_t": w2.T, "b2": b2.reshape(1, output_size),
    }
    return params


def prepare_kernel_params(params, hidden_size):
    """ONE-TIME preprocessing into kernel-ready, lane-dense buffers.

    * g-gate columns of W_ih / W_hh / bias pre-scaled by 2 (so the kernel uses
      the exact identity tanh(z) = 2*sigmoid(2z) - 1 with a single sigmoid).
    * MXU matmul operands stored in bf16 (f32 accumulation in-kernel).
    * MLP head zero-padded to lane-dense 128-wide buffers.
    Call once after init; never inside the per-call forward.
    """
    H = hidden_size
    kp = {"layers": [], "head": {}}
    for lp, ln in zip(params["lstm"], params["ln"]):
        scale = jnp.ones((1, 4 * H), jnp.float32).at[:, 2 * H:3 * H].set(2.0)
        kp["layers"].append({
            "wih": (lp["wih_t"] * scale).astype(jnp.bfloat16),
            "whh": (lp["whh_t"] * scale).astype(jnp.bfloat16),
            "bias": lp["bias"] * scale,
            "gamma": ln["gamma"],
            "beta": ln["beta"],
        })
    hp = params["head"]
    n1 = hp["w1_t"].shape[1]
    out_f = hp["w2_t"].shape[1]
    w1 = jnp.zeros((H, _LANE), jnp.float32).at[:, :n1].set(hp["w1_t"])
    b1 = jnp.zeros((1, _LANE), jnp.float32).at[:, :n1].set(hp["b1"])
    w2 = jnp.zeros((_LANE, _LANE), jnp.float32).at[:n1, :out_f].set(hp["w2_t"])
    b2 = jnp.zeros((1, _LANE), jnp.float32).at[:, :out_f].set(hp["b2"])
    kp["head"] = {"w1": w1.astype(jnp.bfloat16), "b1": b1,
                  "w2": w2.astype(jnp.bfloat16), "b2": b2}
    return kp


# ----------------------------------------------------------------------------
# Pure-JAX f32 reference (numerical sanity check against the fused kernel)
# ----------------------------------------------------------------------------
def reference_forward(params, x, hidden_size, num_layers):
    PREC = jax.lax.Precision.HIGHEST
    B, T, _ = x.shape
    H = hidden_size
    out = x
    for l in range(num_layers):
        lp = params["lstm"][l]
        h = jnp.zeros((B, H), jnp.float32)
        c = jnp.zeros((B, H), jnp.float32)
        seq = []
        for t in range(T):
            gates = (jnp.dot(out[:, t, :], lp["wih_t"], precision=PREC)
                     + jnp.dot(h, lp["whh_t"], precision=PREC) + lp["bias"][0])
            i = jax.nn.sigmoid(gates[:, 0 * H:1 * H])
            f = jax.nn.sigmoid(gates[:, 1 * H:2 * H])
            g = jnp.tanh(gates[:, 2 * H:3 * H])
            o = jax.nn.sigmoid(gates[:, 3 * H:4 * H])
            c = f * c + i * g
            h = o * jnp.tanh(c)
            seq.append(h)
        seq = jnp.stack(seq, axis=1)                        # (B, T, H)
        ln = params["ln"][l]
        mu = jnp.mean(seq, axis=-1, keepdims=True)
        var = jnp.mean((seq - mu) ** 2, axis=-1, keepdims=True)
        out = (seq - mu) * jax.lax.rsqrt(var + _LN_EPS) * ln["gamma"][0] + ln["beta"][0]
    hd = params["head"]
    y = jnp.maximum(jnp.dot(out[:, -1, :], hd["w1_t"], precision=PREC) + hd["b1"][0], 0.0)
    return jnp.dot(y, hd["w2_t"], precision=PREC) + hd["b2"][0]


# ----------------------------------------------------------------------------
if __name__ == "__main__":
    INPUT_SIZE = 4
    HIDDEN_SIZE = 32
    NUM_LAYERS = 2
    OUTPUT_SIZE = 1
    B, T = 2, 8

    key = jax.random.PRNGKey(0)
    k_params, k_x = jax.random.split(key)
    params = init_params(k_params, INPUT_SIZE, HIDDEN_SIZE, NUM_LAYERS,
                         OUTPUT_SIZE)
    kparams = prepare_kernel_params(params, HIDDEN_SIZE)   # one-time, hoisted
    x = jax.random.normal(k_x, (B, T, INPUT_SIZE), dtype=jnp.float32)

    out = stock_price_lstm_forward(kparams, x, HIDDEN_SIZE, NUM_LAYERS,
                                   OUTPUT_SIZE)
    out = jax.block_until_ready(out)
    assert out.shape == (B, OUTPUT_SIZE) and out.dtype == jnp.float32

    # Tolerance reflects bf16 MXU operands (f32 accumulation) across
    # 2 layers x 8 recurrent steps vs. an f32 HIGHEST-precision reference.
    ref = reference_forward(params, x, HIDDEN_SIZE, NUM_LAYERS)
    assert jnp.allclose(out, ref, rtol=2e-2, atol=2e-2), (out, ref)

    print("KERNEL_OK")
</pallas_src>

<mosaic_0001>
module attributes {stable_mosaic.version = 11 : i64} {
  func.func @_fused_stock_lstm_kernel(%arg0: memref<64x4xbf16, #tpu.memory_space<vmem>>, %arg1: memref<4x128xbf16, #tpu.memory_space<vmem>>, %arg2: memref<32x128xbf16, #tpu.memory_space<vmem>>, %arg3: memref<1x128xf32, #tpu.memory_space<vmem>>, %arg4: memref<1x32xf32, #tpu.memory_space<vmem>>, %arg5: memref<1x32xf32, #tpu.memory_space<vmem>>, %arg6: memref<32x128xbf16, #tpu.memory_space<vmem>>, %arg7: memref<32x128xbf16, #tpu.memory_space<vmem>>, %arg8: memref<1x128xf32, #tpu.memory_space<vmem>>, %arg9: memref<1x32xf32, #tpu.memory_space<vmem>>, %arg10: memref<1x32xf32, #tpu.memory_space<vmem>>, %arg11: memref<32x128xbf16, #tpu.memory_space<vmem>>, %arg12: memref<1x128xf32, #tpu.memory_space<vmem>>, %arg13: memref<128x128xbf16, #tpu.memory_space<vmem>>, %arg14: memref<1x128xf32, #tpu.memory_space<vmem>>, %arg15: memref<8x128xf32, #tpu.memory_space<vmem>>) attributes {dimension_semantics = [], scalar_prefetch = 0 : i64, scratch_operands = 0 : i64, tpu.core_type = #tpu.core_type<tc>} {
    %0 = tpu.iota {dimensions = array<i32: 1>} : vector<8x128xi32>
    %c64_i32 = arith.constant 64 : i32
    %1 = vector.broadcast %c64_i32 : i32 to vector<8x128xi32>
    %2 = arith.cmpi sge, %0, %1 : vector<8x128xi32>
    %c96_i32 = arith.constant 96 : i32
    %3 = vector.broadcast %c96_i32 : i32 to vector<8x128xi32>
    %4 = arith.cmpi slt, %0, %3 : vector<8x128xi32>
    %5 = arith.andi %2, %4 : vector<8x128xi1>
    %c0 = arith.constant 0 : index
    %c0_0 = arith.constant 0 : index
    %6 = vector.load %arg1[%c0, %c0_0] : memref<4x128xbf16, #tpu.memory_space<vmem>>, vector<4x128xbf16>
    %c0_1 = arith.constant 0 : index
    %c0_2 = arith.constant 0 : index
    %7 = vector.load %arg6[%c0_1, %c0_2] : memref<32x128xbf16, #tpu.memory_space<vmem>>, vector<32x128xbf16>
    %c0_3 = arith.constant 0 : index
    %c0_4 = arith.constant 0 : index
    %8 = vector.load %arg2[%c0_3, %c0_4] : memref<32x128xbf16, #tpu.memory_space<vmem>>, vector<32x128xbf16>
    %c0_5 = arith.constant 0 : index
    %c0_6 = arith.constant 0 : index
    %9 = vector.load %arg7[%c0_5, %c0_6] : memref<32x128xbf16, #tpu.memory_space<vmem>>, vector<32x128xbf16>
    %c0_7 = arith.constant 0 : index
    %c0_8 = arith.constant 0 : index
    %10 = vector.load %arg3[%c0_7, %c0_8] : memref<1x128xf32, #tpu.memory_space<vmem>>, vector<1x128xf32>
    %c0_9 = arith.constant 0 : index
    %c0_10 = arith.constant 0 : index
    %11 = vector.load %arg8[%c0_9, %c0_10] : memref<1x128xf32, #tpu.memory_space<vmem>>, vector<1x128xf32>
    %c0_11 = arith.constant 0 : index
    %c0_12 = arith.constant 0 : index
    %12 = vector.load %arg4[%c0_11, %c0_12] : memref<1x32xf32, #tpu.memory_space<vmem>>, vector<1x32xf32>
    %c0_13 = arith.constant 0 : index
    %c0_14 = arith.constant 0 : index
    %13 = vector.load %arg9[%c0_13, %c0_14] : memref<1x32xf32, #tpu.memory_space<vmem>>, vector<1x32xf32>
    %c0_15 = arith.constant 0 : index
    %c0_16 = arith.constant 0 : index
    %14 = vector.load %arg5[%c0_15, %c0_16] : memref<1x32xf32, #tpu.memory_space<vmem>>, vector<1x32xf32>
    %c0_17 = arith.constant 0 : index
    %c0_18 = arith.constant 0 : index
    %15 = vector.load %arg10[%c0_17, %c0_18] : memref<1x32xf32, #tpu.memory_space<vmem>>, vector<1x32xf32>
    %c0_19 = arith.constant 0 : index
    %c0_20 = arith.constant 0 : index
    %16 = vector.load %arg0[%c0_19, %c0_20] : memref<64x4xbf16, #tpu.memory_space<vmem>>, vector<64x4xbf16>
    %cst = arith.constant dense<0.000000e+00> : vector<64x128xf32>
    %17 = tpu.matmul %16, %6, %cst {dimension_numbers = #tpu.dot_dimension_numbers<[1], [0], [0], [1], [0, 0, 1, 1], [], []>} : vector<64x4xbf16>, vector<4x128xbf16>, vector<64x128xf32> -> vector<64x128xf32>
    %18 = vector.broadcast %10 : vector<1x128xf32> to vector<64x128xf32>
    %19 = arith.addf %17, %18 : vector<64x128xf32>
    %cst_21 = arith.constant 0.000000e+00 : f32
    %20 = vector.broadcast %cst_21 : f32 to vector<8x32xf32>
    %cst_22 = arith.constant 0.000000e+00 : f32
    %21 = vector.broadcast %cst_22 : f32 to vector<8x32xf32>
    %cst_23 = arith.constant 0.000000e+00 : f32
    %22 = vector.broadcast %cst_23 : f32 to vector<8x32xf32>
    %cst_24 = arith.constant 0.000000e+00 : f32
    %23 = vector.broadcast %cst_24 : f32 to vector<8x32xf32>
    %24 = vector.extract_strided_slice %19 {offsets = [0, 0], sizes = [8, 128], strides = [1, 1]} : vector<64x128xf32> to vector<8x128xf32>
    %25 = arith.truncf %20 : vector<8x32xf32> to vector<8x32xbf16>
    %cst_25 = arith.constant dense<0.000000e+00> : vector<8x128xf32>
    %26 = tpu.matmul %25, %8, %cst_25 {dimension_numbers = #tpu.dot_dimension_numbers<[1], [0], [0], [1], [0, 0, 1, 1], [], []>} : vector<8x32xbf16>, vector<32x128xbf16>, vector<8x128xf32> -> vector<8x128xf32>
    %27 = arith.addf %24, %26 : vector<8x128xf32>
    %28 = arith.negf %27 : vector<8x128xf32>
    %29 = math.exp %28 : vector<8x128xf32>
    %cst_26 = arith.constant 1.000000e+00 : f32
    %30 = vector.broadcast %cst_26 : f32 to vector<8x128xf32>
    %31 = arith.addf %30, %29 : vector<8x128xf32>
    %32 = arith.divf %30, %31 : vector<8x128xf32>
    %cst_27 = arith.constant 2.000000e+00 : f32
    %33 = vector.broadcast %cst_27 : f32 to vector<8x128xf32>
    %34 = arith.mulf %33, %32 : vector<8x128xf32>
    %cst_28 = arith.constant 1.000000e+00 : f32
    %35 = vector.broadcast %cst_28 : f32 to vector<8x128xf32>
    %36 = arith.subf %34, %35 : vector<8x128xf32>
    %37 = arith.select %5, %36, %32 : vector<8x128xi1>, vector<8x128xf32>
    %c64_i32_29 = arith.constant 64 : i32
    %38 = tpu.dynamic_rotate %37 by %c64_i32_29 dim 1 : vector<8x128xf32>, i32 -> vector<8x128xf32>
    %39 = arith.mulf %37, %38 : vector<8x128xf32>
    %40 = vector.extract_strided_slice %39 {offsets = [0, 0], sizes = [8, 32], strides = [1, 1]} : vector<8x128xf32> to vector<8x32xf32>
    %41 = vector.extract_strided_slice %37 {offsets = [0, 32], sizes = [8, 32], strides = [1, 1]} : vector<8x128xf32> to vector<8x32xf32>
    %42 = vector.extract_strided_slice %37 {offsets = [0, 96], sizes = [8, 32], strides = [1, 1]} : vector<8x128xf32> to vector<8x32xf32>
    %43 = arith.mulf %41, %22 : vector<8x32xf32>
    %44 = arith.addf %43, %40 : vector<8x32xf32>
    %45 = math.tanh %44 : vector<8x32xf32>
    %46 = arith.mulf %42, %45 : vector<8x32xf32>
    %cst_30 = arith.constant dense<0.000000e+00> : vector<8xf32>
    %47 = vector.multi_reduction <add>, %46, %cst_30 [1] : vector<8x32xf32> to vector<8xf32>
    %48 = vector.shape_cast %47 : vector<8xf32> to vector<8x1xf32>
    %cst_31 = arith.constant 3.200000e+01 : f32
    %49 = vector.broadcast %cst_31 : f32 to vector<8x1xf32>
    %50 = arith.divf %48, %49 : vector<8x1xf32>
    %51 = arith.mulf %46, %46 : vector<8x32xf32>
    %cst_32 = arith.constant dense<0.000000e+00> : vector<8xf32>
    %52 = vector.multi_reduction <add>, %51, %cst_32 [1] : vector<8x32xf32> to vector<8xf32>
    %53 = vector.shape_cast %52 : vector<8xf32> to vector<8x1xf32>
    %cst_33 = arith.constant 3.200000e+01 : f32
    %54 = vector.broadcast %cst_33 : f32 to vector<8x1xf32>
    %55 = arith.divf %53, %54 : vector<8x1xf32>
    %56 = arith.mulf %50, %50 : vector<8x1xf32>
    %57 = arith.subf %55, %56 : vector<8x1xf32>
    %cst_34 = arith.constant 9.99999974E-6 : f32
    %58 = vector.broadcast %cst_34 : f32 to vector<8x1xf32>
    %59 = arith.addf %57, %58 : vector<8x1xf32>
    %60 = math.rsqrt %59 : vector<8x1xf32>
    %61 = vector.broadcast %50 : vector<8x1xf32> to vector<8x32xf32>
    %62 = arith.subf %46, %61 : vector<8x32xf32>
    %63 = vector.broadcast %60 : vector<8x1xf32> to vector<8x32xf32>
    %64 = arith.mulf %62, %63 : vector<8x32xf32>
    %65 = vector.broadcast %12 : vector<1x32xf32> to vector<8x32xf32>
    %66 = arith.mulf %64, %65 : vector<8x32xf32>
    %67 = vector.broadcast %14 : vector<1x32xf32> to vector<8x32xf32>
    %68 = arith.addf %66, %67 : vector<8x32xf32>
    %69 = arith.truncf %68 : vector<8x32xf32> to vector<8x32xbf16>
    %cst_35 = arith.constant dense<0.000000e+00> : vector<8x128xf32>
    %70 = tpu.matmul %69, %7, %cst_35 {dimension_numbers = #tpu.dot_dimension_numbers<[1], [0], [0], [1], [0, 0, 1, 1], [], []>} : vector<8x32xbf16>, vector<32x128xbf16>, vector<8x128xf32> -> vector<8x128xf32>
    %71 = arith.truncf %21 : vector<8x32xf32> to vector<8x32xbf16>
    %cst_36 = arith.constant dense<0.000000e+00> : vector<8x128xf32>
    %72 = tpu.matmul %71, %9, %cst_36 {dimension_numbers = #tpu.dot_dimension_numbers<[1], [0], [0], [1], [0, 0, 1, 1], [], []>} : vector<8x32xbf16>, vector<32x128xbf16>, vector<8x128xf32> -> vector<8x128xf32>
    %73 = arith.addf %70, %72 : vector<8x128xf32>
    %74 = vector.broadcast %11 : vector<1x128xf32> to vector<8x128xf32>
    %75 = arith.addf %73, %74 : vector<8x128xf32>
    %76 = arith.negf %75 : vector<8x128xf32>
    %77 = math.exp %76 : vector<8x128xf32>
    %cst_37 = arith.constant 1.000000e+00 : f32
    %78 = vector.broadcast %cst_37 : f32 to vector<8x128xf32>
    %79 = arith.addf %78, %77 : vector<8x128xf32>
    %80 = arith.divf %78, %79 : vector<8x128xf32>
    %cst_38 = arith.constant 2.000000e+00 : f32
    %81 = vector.broadcast %cst_38 : f32 to vector<8x128xf32>
    %82 = arith.mulf %81, %80 : vector<8x128xf32>
    %cst_39 = arith.constant 1.000000e+00 : f32
    %83 = vector.broadcast %cst_39 : f32 to vector<8x128xf32>
    %84 = arith.subf %82, %83 : vector<8x128xf32>
    %85 = arith.select %5, %84, %80 : vector<8x128xi1>, vector<8x128xf32>
    %c64_i32_40 = arith.constant 64 : i32
    %86 = tpu.dynamic_rotate %85 by %c64_i32_40 dim 1 : vector<8x128xf32>, i32 -> vector<8x128xf32>
    %87 = arith.mulf %85, %86 : vector<8x128xf32>
    %88 = vector.extract_strided_slice %87 {offsets = [0, 0], sizes = [8, 32], strides = [1, 1]} : vector<8x128xf32> to vector<8x32xf32>
    %89 = vector.extract_strided_slice %85 {offsets = [0, 32], sizes = [8, 32], strides = [1, 1]} : vector<8x128xf32> to vector<8x32xf32>
    %90 = vector.extract_strided_slice %85 {offsets = [0, 96], sizes = [8, 32], strides = [1, 1]} : vector<8x128xf32> to vector<8x32xf32>
    %91 = arith.mulf %89, %23 : vector<8x32xf32>
    %92 = arith.addf %91, %88 : vector<8x32xf32>
    %93 = math.tanh %92 : vector<8x32xf32>
    %94 = arith.mulf %90, %93 : vector<8x32xf32>
    %95 = vector.extract_strided_slice %19 {offsets = [8, 0], sizes = [8, 128], strides = [1, 1]} : vector<64x128xf32> to vector<8x128xf32>
    %96 = arith.truncf %46 : vector<8x32xf32> to vector<8x32xbf16>
    %cst_41 = arith.constant dense<0.000000e+00> : vector<8x128xf32>
    %97 = tpu.matmul %96, %8, %cst_41 {dimension_numbers = #tpu.dot_dimension_numbers<[1], [0], [0], [1], [0, 0, 1, 1], [], []>} : vector<8x32xbf16>, vector<32x128xbf16>, vector<8x128xf32> -> vector<8x128xf32>
    %98 = arith.addf %95, %97 : vector<8x128xf32>
    %99 = arith.negf %98 : vector<8x128xf32>
    %100 = math.exp %99 : vector<8x128xf32>
    %cst_42 = arith.constant 1.000000e+00 : f32
    %101 = vector.broadcast %cst_42 : f32 to vector<8x128xf32>
    %102 = arith.addf %101, %100 : vector<8x128xf32>
    %103 = arith.divf %101, %102 : vector<8x128xf32>
    %cst_43 = arith.constant 2.000000e+00 : f32
    %104 = vector.broadcast %cst_43 : f32 to vector<8x128xf32>
    %105 = arith.mulf %104, %103 : vector<8x128xf32>
    %cst_44 = arith.constant 1.000000e+00 : f32
    %106 = vector.broadcast %cst_44 : f32 to vector<8x128xf32>
    %107 = arith.subf %105, %106 : vector<8x128xf32>
    %108 = arith.select %5, %107, %103 : vector<8x128xi1>, vector<8x128xf32>
    %c64_i32_45 = arith.constant 64 : i32
    %109 = tpu.dynamic_rotate %108 by %c64_i32_45 dim 1 : vector<8x128xf32>, i32 -> vector<8x128xf32>
    %110 = arith.mulf %108, %109 : vector<8x128xf32>
    %111 = vector.extract_strided_slice %110 {offsets = [0, 0], sizes = [8, 32], strides = [1, 1]} : vector<8x128xf32> to vector<8x32xf32>
    %112 = vector.extract_strided_slice %108 {offsets = [0, 32], sizes = [8, 32], strides = [1, 1]} : vector<8x128xf32> to vector<8x32xf32>
    %113 = vector.extract_strided_slice %108 {offsets = [0, 96], sizes = [8, 32], strides = [1, 1]} : vector<8x128xf32> to vector<8x32xf32>
    %114 = arith.mulf %112, %44 : vector<8x32xf32>
    %115 = arith.addf %114, %111 : vector<8x32xf32>
    %116 = math.tanh %115 : vector<8x32xf32>
    %117 = arith.mulf %113, %116 : vector<8x32xf32>
    %cst_46 = arith.constant dense<0.000000e+00> : vector<8xf32>
    %118 = vector.multi_reduction <add>, %117, %cst_46 [1] : vector<8x32xf32> to vector<8xf32>
    %119 = vector.shape_cast %118 : vector<8xf32> to vector<8x1xf32>
    %cst_47 = arith.constant 3.200000e+01 : f32
    %120 = vector.broadcast %cst_47 : f32 to vector<8x1xf32>
    %121 = arith.divf %119, %120 : vector<8x1xf32>
    %122 = arith.mulf %117, %117 : vector<8x32xf32>
    %cst_48 = arith.constant dense<0.000000e+00> : vector<8xf32>
    %123 = vector.multi_reduction <add>, %122, %cst_48 [1] : vector<8x32xf32> to vector<8xf32>
    %124 = vector.shape_cast %123 : vector<8xf32> to vector<8x1xf32>
    %cst_49 = arith.constant 3.200000e+01 : f32
    %125 = vector.broadcast %cst_49 : f32 to vector<8x1xf32>
    %126 = arith.divf %124, %125 : vector<8x1xf32>
    %127 = arith.mulf %121, %121 : vector<8x1xf32>
    %128 = arith.subf %126, %127 : vector<8x1xf32>
    %cst_50 = arith.constant 9.99999974E-6 : f32
    %129 = vector.broadcast %cst_50 : f32 to vector<8x1xf32>
    %130 = arith.addf %128, %129 : vector<8x1xf32>
    %131 = math.rsqrt %130 : vector<8x1xf32>
    %132 = vector.broadcast %121 : vector<8x1xf32> to vector<8x32xf32>
    %133 = arith.subf %117, %132 : vector<8x32xf32>
    %134 = vector.broadcast %131 : vector<8x1xf32> to vector<8x32xf32>
    %135 = arith.mulf %133, %134 : vector<8x32xf32>
    %136 = vector.broadcast %12 : vector<1x32xf32> to vector<8x32xf32>
    %137 = arith.mulf %135, %136 : vector<8x32xf32>
    %138 = vector.broadcast %14 : vector<1x32xf32> to vector<8x32xf32>
    %139 = arith.addf %137, %138 : vector<8x32xf32>
    %140 = arith.truncf %139 : vector<8x32xf32> to vector<8x32xbf16>
    %cst_51 = arith.constant dense<0.000000e+00> : vector<8x128xf32>
    %141 = tpu.matmul %140, %7, %cst_51 {dimension_numbers = #tpu.dot_dimension_numbers<[1], [0], [0], [1], [0, 0, 1, 1], [], []>} : vector<8x32xbf16>, vector<32x128xbf16>, vector<8x128xf32> -> vector<8x128xf32>
    %142 = arith.truncf %94 : vector<8x32xf32> to vector<8x32xbf16>
    %cst_52 = arith.constant dense<0.000000e+00> : vector<8x128xf32>
    %143 = tpu.matmul %142, %9, %cst_52 {dimension_numbers = #tpu.dot_dimension_numbers<[1], [0], [0], [1], [0, 0, 1, 1], [], []>} : vector<8x32xbf16>, vector<32x128xbf16>, vector<8x128xf32> -> vector<8x128xf32>
    %144 = arith.addf %141, %143 : vector<8x128xf32>
    %145 = vector.broadcast %11 : vector<1x128xf32> to vector<8x128xf32>
    %146 = arith.addf %144, %145 : vector<8x128xf32>
    %147 = arith.negf %146 : vector<8x128xf32>
    %148 = math.exp %147 : vector<8x128xf32>
    %cst_53 = arith.constant 1.000000e+00 : f32
    %149 = vector.broadcast %cst_53 : f32 to vector<8x128xf32>
    %150 = arith.addf %149, %148 : vector<8x128xf32>
    %151 = arith.divf %149, %150 : vector<8x128xf32>
    %cst_54 = arith.constant 2.000000e+00 : f32
    %152 = vector.broadcast %cst_54 : f32 to vector<8x128xf32>
    %153 = arith.mulf %152, %151 : vector<8x128xf32>
    %cst_55 = arith.constant 1.000000e+00 : f32
    %154 = vector.broadcast %cst_55 : f32 to vector<8x128xf32>
    %155 = arith.subf %153, %154 : vector<8x128xf32>
    %156 = arith.select %5, %155, %151 : vector<8x128xi1>, vector<8x128xf32>
    %c64_i32_56 = arith.constant 64 : i32
    %157 = tpu.dynamic_rotate %156 by %c64_i32_56 dim 1 : vector<8x128xf32>, i32 -> vector<8x128xf32>
    %158 = arith.mulf %156, %157 : vector<8x128xf32>
    %159 = vector.extract_strided_slice %158 {offsets = [0, 0], sizes = [8, 32], strides = [1, 1]} : vector<8x128xf32> to vector<8x32xf32>
    %160 = vector.extract_strided_slice %156 {offsets = [0, 32], sizes = [8, 32], strides = [1, 1]} : vector<8x128xf32> to vector<8x32xf32>
    %161 = vector.extract_strided_slice %156 {offsets = [0, 96], sizes = [8, 32], strides = [1, 1]} : vector<8x128xf32> to vector<8x32xf32>
    %162 = arith.mulf %160, %92 : vector<8x32xf32>
    %163 = arith.addf %162, %159 : vector<8x32xf32>
    %164 = math.tanh %163 : vector<8x32xf32>
    %165 = arith.mulf %161, %164 : vector<8x32xf32>
    %166 = vector.extract_strided_slice %19 {offsets = [16, 0], sizes = [8, 128], strides = [1, 1]} : vector<64x128xf32> to vector<8x128xf32>
    %167 = arith.truncf %117 : vector<8x32xf32> to vector<8x32xbf16>
    %cst_57 = arith.constant dense<0.000000e+00> : vector<8x128xf32>
    %168 = tpu.matmul %167, %8, %cst_57 {dimension_numbers = #tpu.dot_dimension_numbers<[1], [0], [0], [1], [0, 0, 1, 1], [], []>} : vector<8x32xbf16>, vector<32x128xbf16>, vector<8x128xf32> -> vector<8x128xf32>
    %169 = arith.addf %166, %168 : vector<8x128xf32>
    %170 = arith.negf %169 : vector<8x128xf32>
    %171 = math.exp %170 : vector<8x128xf32>
    %cst_58 = arith.constant 1.000000e+00 : f32
    %172 = vector.broadcast %cst_58 : f32 to vector<8x128xf32>
    %173 = arith.addf %172, %171 : vector<8x128xf32>
    %174 = arith.divf %172, %173 : vector<8x128xf32>
    %cst_59 = arith.constant 2.000000e+00 : f32
    %175 = vector.broadcast %cst_59 : f32 to vector<8x128xf32>
    %176 = arith.mulf %175, %174 : vector<8x128xf32>
    %cst_60 = arith.constant 1.000000e+00 : f32
    %177 = vector.broadcast %cst_60 : f32 to vector<8x128xf32>
    %178 = arith.subf %176, %177 : vector<8x128xf32>
    %179 = arith.select %5, %178, %174 : vector<8x128xi1>, vector<8x128xf32>
    %c64_i32_61 = arith.constant 64 : i32
    %180 = tpu.dynamic_rotate %179 by %c64_i32_61 dim 1 : vector<8x128xf32>, i32 -> vector<8x128xf32>
    %181 = arith.mulf %179, %180 : vector<8x128xf32>
    %182 = vector.extract_strided_slice %181 {offsets = [0, 0], sizes = [8, 32], strides = [1, 1]} : vector<8x128xf32> to vector<8x32xf32>
    %183 = vector.extract_strided_slice %179 {offsets = [0, 32], sizes = [8, 32], strides = [1, 1]} : vector<8x128xf32> to vector<8x32xf32>
    %184 = vector.extract_strided_slice %179 {offsets = [0, 96], sizes = [8, 32], strides = [1, 1]} : vector<8x128xf32> to vector<8x32xf32>
    %185 = arith.mulf %183, %115 : vector<8x32xf32>
    %186 = arith.addf %185, %182 : vector<8x32xf32>
    %187 = math.tanh %186 : vector<8x32xf32>
    %188 = arith.mulf %184, %187 : vector<8x32xf32>
    %cst_62 = arith.constant dense<0.000000e+00> : vector<8xf32>
    %189 = vector.multi_reduction <add>, %188, %cst_62 [1] : vector<8x32xf32> to vector<8xf32>
    %190 = vector.shape_cast %189 : vector<8xf32> to vector<8x1xf32>
    %cst_63 = arith.constant 3.200000e+01 : f32
    %191 = vector.broadcast %cst_63 : f32 to vector<8x1xf32>
    %192 = arith.divf %190, %191 : vector<8x1xf32>
    %193 = arith.mulf %188, %188 : vector<8x32xf32>
    %cst_64 = arith.constant dense<0.000000e+00> : vector<8xf32>
    %194 = vector.multi_reduction <add>, %193, %cst_64 [1] : vector<8x32xf32> to vector<8xf32>
    %195 = vector.shape_cast %194 : vector<8xf32> to vector<8x1xf32>
    %cst_65 = arith.constant 3.200000e+01 : f32
    %196 = vector.broadcast %cst_65 : f32 to vector<8x1xf32>
    %197 = arith.divf %195, %196 : vector<8x1xf32>
    %198 = arith.mulf %192, %192 : vector<8x1xf32>
    %199 = arith.subf %197, %198 : vector<8x1xf32>
    %cst_66 = arith.constant 9.99999974E-6 : f32
    %200 = vector.broadcast %cst_66 : f32 to vector<8x1xf32>
    %201 = arith.addf %199, %200 : vector<8x1xf32>
    %202 = math.rsqrt %201 : vector<8x1xf32>
    %203 = vector.broadcast %192 : vector<8x1xf32> to vector<8x32xf32>
    %204 = arith.subf %188, %203 : vector<8x32xf32>
    %205 = vector.broadcast %202 : vector<8x1xf32> to vector<8x32xf32>
    %206 = arith.mulf %204, %205 : vector<8x32xf32>
    %207 = vector.broadcast %12 : vector<1x32xf32> to vector<8x32xf32>
    %208 = arith.mulf %206, %207 : vector<8x32xf32>
    %209 = vector.broadcast %14 : vector<1x32xf32> to vector<8x32xf32>
    %210 = arith.addf %208, %209 : vector<8x32xf32>
    %211 = arith.truncf %210 : vector<8x32xf32> to vector<8x32xbf16>
    %cst_67 = arith.constant dense<0.000000e+00> : vector<8x128xf32>
    %212 = tpu.matmul %211, %7, %cst_67 {dimension_numbers = #tpu.dot_dimension_numbers<[1], [0], [0], [1], [0, 0, 1, 1], [], []>} : vector<8x32xbf16>, vector<32x128xbf16>, vector<8x128xf32> -> vector<8x128xf32>
    %213 = arith.truncf %165 : vector<8x32xf32> to vector<8x32xbf16>
    %cst_68 = arith.constant dense<0.000000e+00> : vector<8x128xf32>
    %214 = tpu.matmul %213, %9, %cst_68 {dimension_numbers = #tpu.dot_dimension_numbers<[1], [0], [0], [1], [0, 0, 1, 1], [], []>} : vector<8x32xbf16>, vector<32x128xbf16>, vector<8x128xf32> -> vector<8x128xf32>
    %215 = arith.addf %212, %214 : vector<8x128xf32>
    %216 = vector.broadcast %11 : vector<1x128xf32> to vector<8x128xf32>
    %217 = arith.addf %215, %216 : vector<8x128xf32>
    %218 = arith.negf %217 : vector<8x128xf32>
    %219 = math.exp %218 : vector<8x128xf32>
    %cst_69 = arith.constant 1.000000e+00 : f32
    %220 = vector.broadcast %cst_69 : f32 to vector<8x128xf32>
    %221 = arith.addf %220, %219 : vector<8x128xf32>
    %222 = arith.divf %220, %221 : vector<8x128xf32>
    %cst_70 = arith.constant 2.000000e+00 : f32
    %223 = vector.broadcast %cst_70 : f32 to vector<8x128xf32>
    %224 = arith.mulf %223, %222 : vector<8x128xf32>
    %cst_71 = arith.constant 1.000000e+00 : f32
    %225 = vector.broadcast %cst_71 : f32 to vector<8x128xf32>
    %226 = arith.subf %224, %225 : vector<8x128xf32>
    %227 = arith.select %5, %226, %222 : vector<8x128xi1>, vector<8x128xf32>
    %c64_i32_72 = arith.constant 64 : i32
    %228 = tpu.dynamic_rotate %227 by %c64_i32_72 dim 1 : vector<8x128xf32>, i32 -> vector<8x128xf32>
    %229 = arith.mulf %227, %228 : vector<8x128xf32>
    %230 = vector.extract_strided_slice %229 {offsets = [0, 0], sizes = [8, 32], strides = [1, 1]} : vector<8x128xf32> to vector<8x32xf32>
    %231 = vector.extract_strided_slice %227 {offsets = [0, 32], sizes = [8, 32], strides = [1, 1]} : vector<8x128xf32> to vector<8x32xf32>
    %232 = vector.extract_strided_slice %227 {offsets = [0, 96], sizes = [8, 32], strides = [1, 1]} : vector<8x128xf32> to vector<8x32xf32>
    %233 = arith.mulf %231, %163 : vector<8x32xf32>
    %234 = arith.addf %233, %230 : vector<8x32xf32>
    %235 = math.tanh %234 : vector<8x32xf32>
    %236 = arith.mulf %232, %235 : vector<8x32xf32>
    %237 = vector.extract_strided_slice %19 {offsets = [24, 0], sizes = [8, 128], strides = [1, 1]} : vector<64x128xf32> to vector<8x128xf32>
    %238 = arith.truncf %188 : vector<8x32xf32> to vector<8x32xbf16>
    %cst_73 = arith.constant dense<0.000000e+00> : vector<8x128xf32>
    %239 = tpu.matmul %238, %8, %cst_73 {dimension_numbers = #tpu.dot_dimension_numbers<[1], [0], [0], [1], [0, 0, 1, 1], [], []>} : vector<8x32xbf16>, vector<32x128xbf16>, vector<8x128xf32> -> vector<8x128xf32>
    %240 = arith.addf %237, %239 : vector<8x128xf32>
    %241 = arith.negf %240 : vector<8x128xf32>
    %242 = math.exp %241 : vector<8x128xf32>
    %cst_74 = arith.constant 1.000000e+00 : f32
    %243 = vector.broadcast %cst_74 : f32 to vector<8x128xf32>
    %244 = arith.addf %243, %242 : vector<8x128xf32>
    %245 = arith.divf %243, %244 : vector<8x128xf32>
    %cst_75 = arith.constant 2.000000e+00 : f32
    %246 = vector.broadcast %cst_75 : f32 to vector<8x128xf32>
    %247 = arith.mulf %246, %245 : vector<8x128xf32>
    %cst_76 = arith.constant 1.000000e+00 : f32
    %248 = vector.broadcast %cst_76 : f32 to vector<8x128xf32>
    %249 = arith.subf %247, %248 : vector<8x128xf32>
    %250 = arith.select %5, %249, %245 : vector<8x128xi1>, vector<8x128xf32>
    %c64_i32_77 = arith.constant 64 : i32
    %251 = tpu.dynamic_rotate %250 by %c64_i32_77 dim 1 : vector<8x128xf32>, i32 -> vector<8x128xf32>
    %252 = arith.mulf %250, %251 : vector<8x128xf32>
    %253 = vector.extract_strided_slice %252 {offsets = [0, 0], sizes = [8, 32], strides = [1, 1]} : vector<8x128xf32> to vector<8x32xf32>
    %254 = vector.extract_strided_slice %250 {offsets = [0, 32], sizes = [8, 32], strides = [1, 1]} : vector<8x128xf32> to vector<8x32xf32>
    %255 = vector.extract_strided_slice %250 {offsets = [0, 96], sizes = [8, 32], strides = [1, 1]} : vector<8x128xf32> to vector<8x32xf32>
    %256 = arith.mulf %254, %186 : vector<8x32xf32>
    %257 = arith.addf %256, %253 : vector<8x32xf32>
    %258 = math.tanh %257 : vector<8x32xf32>
    %259 = arith.mulf %255, %258 : vector<8x32xf32>
    %cst_78 = arith.constant dense<0.000000e+00> : vector<8xf32>
    %260 = vector.multi_reduction <add>, %259, %cst_78 [1] : vector<8x32xf32> to vector<8xf32>
    %261 = vector.shape_cast %260 : vector<8xf32> to vector<8x1xf32>
    %cst_79 = arith.constant 3.200000e+01 : f32
    %262 = vector.broadcast %cst_79 : f32 to vector<8x1xf32>
    %263 = arith.divf %261, %262 : vector<8x1xf32>
    %264 = arith.mulf %259, %259 : vector<8x32xf32>
    %cst_80 = arith.constant dense<0.000000e+00> : vector<8xf32>
    %265 = vector.multi_reduction <add>, %264, %cst_80 [1] : vector<8x32xf32> to vector<8xf32>
    %266 = vector.shape_cast %265 : vector<8xf32> to vector<8x1xf32>
    %cst_81 = arith.constant 3.200000e+01 : f32
    %267 = vector.broadcast %cst_81 : f32 to vector<8x1xf32>
    %268 = arith.divf %266, %267 : vector<8x1xf32>
    %269 = arith.mulf %263, %263 : vector<8x1xf32>
    %270 = arith.subf %268, %269 : vector<8x1xf32>
    %cst_82 = arith.constant 9.99999974E-6 : f32
    %271 = vector.broadcast %cst_82 : f32 to vector<8x1xf32>
    %272 = arith.addf %270, %271 : vector<8x1xf32>
    %273 = math.rsqrt %272 : vector<8x1xf32>
    %274 = vector.broadcast %263 : vector<8x1xf32> to vector<8x32xf32>
    %275 = arith.subf %259, %274 : vector<8x32xf32>
    %276 = vector.broadcast %273 : vector<8x1xf32> to vector<8x32xf32>
    %277 = arith.mulf %275, %276 : vector<8x32xf32>
    %278 = vector.broadcast %12 : vector<1x32xf32> to vector<8x32xf32>
    %279 = arith.mulf %277, %278 : vector<8x32xf32>
    %280 = vector.broadcast %14 : vector<1x32xf32> to vector<8x32xf32>
    %281 = arith.addf %279, %280 : vector<8x32xf32>
    %282 = arith.truncf %281 : vector<8x32xf32> to vector<8x32xbf16>
    %cst_83 = arith.constant dense<0.000000e+00> : vector<8x128xf32>
    %283 = tpu.matmul %282, %7, %cst_83 {dimension_numbers = #tpu.dot_dimension_numbers<[1], [0], [0], [1], [0, 0, 1, 1], [], []>} : vector<8x32xbf16>, vector<32x128xbf16>, vector<8x128xf32> -> vector<8x128xf32>
    %284 = arith.truncf %236 : vector<8x32xf32> to vector<8x32xbf16>
    %cst_84 = arith.constant dense<0.000000e+00> : vector<8x128xf32>
    %285 = tpu.matmul %284, %9, %cst_84 {dimension_numbers = #tpu.dot_dimension_numbers<[1], [0], [0], [1], [0, 0, 1, 1], [], []>} : vector<8x32xbf16>, vector<32x128xbf16>, vector<8x128xf32> -> vector<8x128xf32>
    %286 = arith.addf %283, %285 : vector<8x128xf32>
    %287 = vector.broadcast %11 : vector<1x128xf32> to vector<8x128xf32>
    %288 = arith.addf %286, %287 : vector<8x128xf32>
    %289 = arith.negf %288 : vector<8x128xf32>
    %290 = math.exp %289 : vector<8x128xf32>
    %cst_85 = arith.constant 1.000000e+00 : f32
    %291 = vector.broadcast %cst_85 : f32 to vector<8x128xf32>
    %292 = arith.addf %291, %290 : vector<8x128xf32>
    %293 = arith.divf %291, %292 : vector<8x128xf32>
    %cst_86 = arith.constant 2.000000e+00 : f32
    %294 = vector.broadcast %cst_86 : f32 to vector<8x128xf32>
    %295 = arith.mulf %294, %293 : vector<8x128xf32>
    %cst_87 = arith.constant 1.000000e+00 : f32
    %296 = vector.broadcast %cst_87 : f32 to vector<8x128xf32>
    %297 = arith.subf %295, %296 : vector<8x128xf32>
    %298 = arith.select %5, %297, %293 : vector<8x128xi1>, vector<8x128xf32>
    %c64_i32_88 = arith.constant 64 : i32
    %299 = tpu.dynamic_rotate %298 by %c64_i32_88 dim 1 : vector<8x128xf32>, i32 -> vector<8x128xf32>
    %300 = arith.mulf %298, %299 : vector<8x128xf32>
    %301 = vector.extract_strided_slice %300 {offsets = [0, 0], sizes = [8, 32], strides = [1, 1]} : vector<8x128xf32> to vector<8x32xf32>
    %302 = vector.extract_strided_slice %298 {offsets = [0, 32], sizes = [8, 32], strides = [1, 1]} : vector<8x128xf32> to vector<8x32xf32>
    %303 = vector.extract_strided_slice %298 {offsets = [0, 96], sizes = [8, 32], strides = [1, 1]} : vector<8x128xf32> to vector<8x32xf32>
    %304 = arith.mulf %302, %234 : vector<8x32xf32>
    %305 = arith.addf %304, %301 : vector<8x32xf32>
    %306 = math.tanh %305 : vector<8x32xf32>
    %307 = arith.mulf %303, %306 : vector<8x32xf32>
    %308 = vector.extract_strided_slice %19 {offsets = [32, 0], sizes = [8, 128], strides = [1, 1]} : vector<64x128xf32> to vector<8x128xf32>
    %309 = arith.truncf %259 : vector<8x32xf32> to vector<8x32xbf16>
    %cst_89 = arith.constant dense<0.000000e+00> : vector<8x128xf32>
    %310 = tpu.matmul %309, %8, %cst_89 {dimension_numbers = #tpu.dot_dimension_numbers<[1], [0], [0], [1], [0, 0, 1, 1], [], []>} : vector<8x32xbf16>, vector<32x128xbf16>, vector<8x128xf32> -> vector<8x128xf32>
    %311 = arith.addf %308, %310 : vector<8x128xf32>
    %312 = arith.negf %311 : vector<8x128xf32>
    %313 = math.exp %312 : vector<8x128xf32>
    %cst_90 = arith.constant 1.000000e+00 : f32
    %314 = vector.broadcast %cst_90 : f32 to vector<8x128xf32>
    %315 = arith.addf %314, %313 : vector<8x128xf32>
    %316 = arith.divf %314, %315 : vector<8x128xf32>
    %cst_91 = arith.constant 2.000000e+00 : f32
    %317 = vector.broadcast %cst_91 : f32 to vector<8x128xf32>
    %318 = arith.mulf %317, %316 : vector<8x128xf32>
    %cst_92 = arith.constant 1.000000e+00 : f32
    %319 = vector.broadcast %cst_92 : f32 to vector<8x128xf32>
    %320 = arith.subf %318, %319 : vector<8x128xf32>
    %321 = arith.select %5, %320, %316 : vector<8x128xi1>, vector<8x128xf32>
    %c64_i32_93 = arith.constant 64 : i32
    %322 = tpu.dynamic_rotate %321 by %c64_i32_93 dim 1 : vector<8x128xf32>, i32 -> vector<8x128xf32>
    %323 = arith.mulf %321, %322 : vector<8x128xf32>
    %324 = vector.extract_strided_slice %323 {offsets = [0, 0], sizes = [8, 32], strides = [1, 1]} : vector<8x128xf32> to vector<8x32xf32>
    %325 = vector.extract_strided_slice %321 {offsets = [0, 32], sizes = [8, 32], strides = [1, 1]} : vector<8x128xf32> to vector<8x32xf32>
    %326 = vector.extract_strided_slice %321 {offsets = [0, 96], sizes = [8, 32], strides = [1, 1]} : vector<8x128xf32> to vector<8x32xf32>
    %327 = arith.mulf %325, %257 : vector<8x32xf32>
    %328 = arith.addf %327, %324 : vector<8x32xf32>
    %329 = math.tanh %328 : vector<8x32xf32>
    %330 = arith.mulf %326, %329 : vector<8x32xf32>
    %cst_94 = arith.constant dense<0.000000e+00> : vector<8xf32>
    %331 = vector.multi_reduction <add>, %330, %cst_94 [1] : vector<8x32xf32> to vector<8xf32>
    %332 = vector.shape_cast %331 : vector<8xf32> to vector<8x1xf32>
    %cst_95 = arith.constant 3.200000e+01 : f32
    %333 = vector.broadcast %cst_95 : f32 to vector<8x1xf32>
    %334 = arith.divf %332, %333 : vector<8x1xf32>
    %335 = arith.mulf %330, %330 : vector<8x32xf32>
    %cst_96 = arith.constant dense<0.000000e+00> : vector<8xf32>
    %336 = vector.multi_reduction <add>, %335, %cst_96 [1] : vector<8x32xf32> to vector<8xf32>
    %337 = vector.shape_cast %336 : vector<8xf32> to vector<8x1xf32>
    %cst_97 = arith.constant 3.200000e+01 : f32
    %338 = vector.broadcast %cst_97 : f32 to vector<8x1xf32>
    %339 = arith.divf %337, %338 : vector<8x1xf32>
    %340 = arith.mulf %334, %334 : vector<8x1xf32>
    %341 = arith.subf %339, %340 : vector<8x1xf32>
    %cst_98 = arith.constant 9.99999974E-6 : f32
    %342 = vector.broadcast %cst_98 : f32 to vector<8x1xf32>
    %343 = arith.addf %341, %342 : vector<8x1xf32>
    %344 = math.rsqrt %343 : vector<8x1xf32>
    %345 = vector.broadcast %334 : vector<8x1xf32> to vector<8x32xf32>
    %346 = arith.subf %330, %345 : vector<8x32xf32>
    %347 = vector.broadcast %344 : vector<8x1xf32> to vector<8x32xf32>
    %348 = arith.mulf %346, %347 : vector<8x32xf32>
    %349 = vector.broadcast %12 : vector<1x32xf32> to vector<8x32xf32>
    %350 = arith.mulf %348, %349 : vector<8x32xf32>
    %351 = vector.broadcast %14 : vector<1x32xf32> to vector<8x32xf32>
    %352 = arith.addf %350, %351 : vector<8x32xf32>
    %353 = arith.truncf %352 : vector<8x32xf32> to vector<8x32xbf16>
    %cst_99 = arith.constant dense<0.000000e+00> : vector<8x128xf32>
    %354 = tpu.matmul %353, %7, %cst_99 {dimension_numbers = #tpu.dot_dimension_numbers<[1], [0], [0], [1], [0, 0, 1, 1], [], []>} : vector<8x32xbf16>, vector<32x128xbf16>, vector<8x128xf32> -> vector<8x128xf32>
    %355 = arith.truncf %307 : vector<8x32xf32> to vector<8x32xbf16>
    %cst_100 = arith.constant dense<0.000000e+00> : vector<8x128xf32>
    %356 = tpu.matmul %355, %9, %cst_100 {dimension_numbers = #tpu.dot_dimension_numbers<[1], [0], [0], [1], [0, 0, 1, 1], [], []>} : vector<8x32xbf16>, vector<32x128xbf16>, vector<8x128xf32> -> vector<8x128xf32>
    %357 = arith.addf %354, %356 : vector<8x128xf32>
    %358 = vector.broadcast %11 : vector<1x128xf32> to vector<8x128xf32>
    %359 = arith.addf %357, %358 : vector<8x128xf32>
    %360 = arith.negf %359 : vector<8x128xf32>
    %361 = math.exp %360 : vector<8x128xf32>
    %cst_101 = arith.constant 1.000000e+00 : f32
    %362 = vector.broadcast %cst_101 : f32 to vector<8x128xf32>
    %363 = arith.addf %362, %361 : vector<8x128xf32>
    %364 = arith.divf %362, %363 : vector<8x128xf32>
    %cst_102 = arith.constant 2.000000e+00 : f32
    %365 = vector.broadcast %cst_102 : f32 to vector<8x128xf32>
    %366 = arith.mulf %365, %364 : vector<8x128xf32>
    %cst_103 = arith.constant 1.000000e+00 : f32
    %367 = vector.broadcast %cst_103 : f32 to vector<8x128xf32>
    %368 = arith.subf %366, %367 : vector<8x128xf32>
    %369 = arith.select %5, %368, %364 : vector<8x128xi1>, vector<8x128xf32>
    %c64_i32_104 = arith.constant 64 : i32
    %370 = tpu.dynamic_rotate %369 by %c64_i32_104 dim 1 : vector<8x128xf32>, i32 -> vector<8x128xf32>
    %371 = arith.mulf %369, %370 : vector<8x128xf32>
    %372 = vector.extract_strided_slice %371 {offsets = [0, 0], sizes = [8, 32], strides = [1, 1]} : vector<8x128xf32> to vector<8x32xf32>
    %373 = vector.extract_strided_slice %369 {offsets = [0, 32], sizes = [8, 32], strides = [1, 1]} : vector<8x128xf32> to vector<8x32xf32>
    %374 = vector.extract_strided_slice %369 {offsets = [0, 96], sizes = [8, 32], strides = [1, 1]} : vector<8x128xf32> to vector<8x32xf32>
    %375 = arith.mulf %373, %305 : vector<8x32xf32>
    %376 = arith.addf %375, %372 : vector<8x32xf32>
    %377 = math.tanh %376 : vector<8x32xf32>
    %378 = arith.mulf %374, %377 : vector<8x32xf32>
    %379 = vector.extract_strided_slice %19 {offsets = [40, 0], sizes = [8, 128], strides = [1, 1]} : vector<64x128xf32> to vector<8x128xf32>
    %380 = arith.truncf %330 : vector<8x32xf32> to vector<8x32xbf16>
    %cst_105 = arith.constant dense<0.000000e+00> : vector<8x128xf32>
    %381 = tpu.matmul %380, %8, %cst_105 {dimension_numbers = #tpu.dot_dimension_numbers<[1], [0], [0], [1], [0, 0, 1, 1], [], []>} : vector<8x32xbf16>, vector<32x128xbf16>, vector<8x128xf32> -> vector<8x128xf32>
    %382 = arith.addf %379, %381 : vector<8x128xf32>
    %383 = arith.negf %382 : vector<8x128xf32>
    %384 = math.exp %383 : vector<8x128xf32>
    %cst_106 = arith.constant 1.000000e+00 : f32
    %385 = vector.broadcast %cst_106 : f32 to vector<8x128xf32>
    %386 = arith.addf %385, %384 : vector<8x128xf32>
    %387 = arith.divf %385, %386 : vector<8x128xf32>
    %cst_107 = arith.constant 2.000000e+00 : f32
    %388 = vector.broadcast %cst_107 : f32 to vector<8x128xf32>
    %389 = arith.mulf %388, %387 : vector<8x128xf32>
    %cst_108 = arith.constant 1.000000e+00 : f32
    %390 = vector.broadcast %cst_108 : f32 to vector<8x128xf32>
    %391 = arith.subf %389, %390 : vector<8x128xf32>
    %392 = arith.select %5, %391, %387 : vector<8x128xi1>, vector<8x128xf32>
    %c64_i32_109 = arith.constant 64 : i32
    %393 = tpu.dynamic_rotate %392 by %c64_i32_109 dim 1 : vector<8x128xf32>, i32 -> vector<8x128xf32>
    %394 = arith.mulf %392, %393 : vector<8x128xf32>
    %395 = vector.extract_strided_slice %394 {offsets = [0, 0], sizes = [8, 32], strides = [1, 1]} : vector<8x128xf32> to vector<8x32xf32>
    %396 = vector.extract_strided_slice %392 {offsets = [0, 32], sizes = [8, 32], strides = [1, 1]} : vector<8x128xf32> to vector<8x32xf32>
    %397 = vector.extract_strided_slice %392 {offsets = [0, 96], sizes = [8, 32], strides = [1, 1]} : vector<8x128xf32> to vector<8x32xf32>
    %398 = arith.mulf %396, %328 : vector<8x32xf32>
    %399 = arith.addf %398, %395 : vector<8x32xf32>
    %400 = math.tanh %399 : vector<8x32xf32>
    %401 = arith.mulf %397, %400 : vector<8x32xf32>
    %cst_110 = arith.constant dense<0.000000e+00> : vector<8xf32>
    %402 = vector.multi_reduction <add>, %401, %cst_110 [1] : vector<8x32xf32> to vector<8xf32>
    %403 = vector.shape_cast %402 : vector<8xf32> to vector<8x1xf32>
    %cst_111 = arith.constant 3.200000e+01 : f32
    %404 = vector.broadcast %cst_111 : f32 to vector<8x1xf32>
    %405 = arith.divf %403, %404 : vector<8x1xf32>
    %406 = arith.mulf %401, %401 : vector<8x32xf32>
    %cst_112 = arith.constant dense<0.000000e+00> : vector<8xf32>
    %407 = vector.multi_reduction <add>, %406, %cst_112 [1] : vector<8x32xf32> to vector<8xf32>
    %408 = vector.shape_cast %407 : vector<8xf32> to vector<8x1xf32>
    %cst_113 = arith.constant 3.200000e+01 : f32
    %409 = vector.broadcast %cst_113 : f32 to vector<8x1xf32>
    %410 = arith.divf %408, %409 : vector<8x1xf32>
    %411 = arith.mulf %405, %405 : vector<8x1xf32>
    %412 = arith.subf %410, %411 : vector<8x1xf32>
    %cst_114 = arith.constant 9.99999974E-6 : f32
    %413 = vector.broadcast %cst_114 : f32 to vector<8x1xf32>
    %414 = arith.addf %412, %413 : vector<8x1xf32>
    %415 = math.rsqrt %414 : vector<8x1xf32>
    %416 = vector.broadcast %405 : vector<8x1xf32> to vector<8x32xf32>
    %417 = arith.subf %401, %416 : vector<8x32xf32>
    %418 = vector.broadcast %415 : vector<8x1xf32> to vector<8x32xf32>
    %419 = arith.mulf %417, %418 : vector<8x32xf32>
    %420 = vector.broadcast %12 : vector<1x32xf32> to vector<8x32xf32>
    %421 = arith.mulf %419, %420 : vector<8x32xf32>
    %422 = vector.broadcast %14 : vector<1x32xf32> to vector<8x32xf32>
    %423 = arith.addf %421, %422 : vector<8x32xf32>
    %424 = arith.truncf %423 : vector<8x32xf32> to vector<8x32xbf16>
    %cst_115 = arith.constant dense<0.000000e+00> : vector<8x128xf32>
    %425 = tpu.matmul %424, %7, %cst_115 {dimension_numbers = #tpu.dot_dimension_numbers<[1], [0], [0], [1], [0, 0, 1, 1], [], []>} : vector<8x32xbf16>, vector<32x128xbf16>, vector<8x128xf32> -> vector<8x128xf32>
    %426 = arith.truncf %378 : vector<8x32xf32> to vector<8x32xbf16>
    %cst_116 = arith.constant dense<0.000000e+00> : vector<8x128xf32>
    %427 = tpu.matmul %426, %9, %cst_116 {dimension_numbers = #tpu.dot_dimension_numbers<[1], [0], [0], [1], [0, 0, 1, 1], [], []>} : vector<8x32xbf16>, vector<32x128xbf16>, vector<8x128xf32> -> vector<8x128xf32>
    %428 = arith.addf %425, %427 : vector<8x128xf32>
    %429 = vector.broadcast %11 : vector<1x128xf32> to vector<8x128xf32>
    %430 = arith.addf %428, %429 : vector<8x128xf32>
    %431 = arith.negf %430 : vector<8x128xf32>
    %432 = math.exp %431 : vector<8x128xf32>
    %cst_117 = arith.constant 1.000000e+00 : f32
    %433 = vector.broadcast %cst_117 : f32 to vector<8x128xf32>
    %434 = arith.addf %433, %432 : vector<8x128xf32>
    %435 = arith.divf %433, %434 : vector<8x128xf32>
    %cst_118 = arith.constant 2.000000e+00 : f32
    %436 = vector.broadcast %cst_118 : f32 to vector<8x128xf32>
    %437 = arith.mulf %436, %435 : vector<8x128xf32>
    %cst_119 = arith.constant 1.000000e+00 : f32
    %438 = vector.broadcast %cst_119 : f32 to vector<8x128xf32>
    %439 = arith.subf %437, %438 : vector<8x128xf32>
    %440 = arith.select %5, %439, %435 : vector<8x128xi1>, vector<8x128xf32>
    %c64_i32_120 = arith.constant 64 : i32
    %441 = tpu.dynamic_rotate %440 by %c64_i32_120 dim 1 : vector<8x128xf32>, i32 -> vector<8x128xf32>
    %442 = arith.mulf %440, %441 : vector<8x128xf32>
    %443 = vector.extract_strided_slice %442 {offsets = [0, 0], sizes = [8, 32], strides = [1, 1]} : vector<8x128xf32> to vector<8x32xf32>
    %444 = vector.extract_strided_slice %440 {offsets = [0, 32], sizes = [8, 32], strides = [1, 1]} : vector<8x128xf32> to vector<8x32xf32>
    %445 = vector.extract_strided_slice %440 {offsets = [0, 96], sizes = [8, 32], strides = [1, 1]} : vector<8x128xf32> to vector<8x32xf32>
    %446 = arith.mulf %444, %376 : vector<8x32xf32>
    %447 = arith.addf %446, %443 : vector<8x32xf32>
    %448 = math.tanh %447 : vector<8x32xf32>
    %449 = arith.mulf %445, %448 : vector<8x32xf32>
    %450 = vector.extract_strided_slice %19 {offsets = [48, 0], sizes = [8, 128], strides = [1, 1]} : vector<64x128xf32> to vector<8x128xf32>
    %451 = arith.truncf %401 : vector<8x32xf32> to vector<8x32xbf16>
    %cst_121 = arith.constant dense<0.000000e+00> : vector<8x128xf32>
    %452 = tpu.matmul %451, %8, %cst_121 {dimension_numbers = #tpu.dot_dimension_numbers<[1], [0], [0], [1], [0, 0, 1, 1], [], []>} : vector<8x32xbf16>, vector<32x128xbf16>, vector<8x128xf32> -> vector<8x128xf32>
    %453 = arith.addf %450, %452 : vector<8x128xf32>
    %454 = arith.negf %453 : vector<8x128xf32>
    %455 = math.exp %454 : vector<8x128xf32>
    %cst_122 = arith.constant 1.000000e+00 : f32
    %456 = vector.broadcast %cst_122 : f32 to vector<8x128xf32>
    %457 = arith.addf %456, %455 : vector<8x128xf32>
    %458 = arith.divf %456, %457 : vector<8x128xf32>
    %cst_123 = arith.constant 2.000000e+00 : f32
    %459 = vector.broadcast %cst_123 : f32 to vector<8x128xf32>
    %460 = arith.mulf %459, %458 : vector<8x128xf32>
    %cst_124 = arith.constant 1.000000e+00 : f32
    %461 = vector.broadcast %cst_124 : f32 to vector<8x128xf32>
    %462 = arith.subf %460, %461 : vector<8x128xf32>
    %463 = arith.select %5, %462, %458 : vector<8x128xi1>, vector<8x128xf32>
    %c64_i32_125 = arith.constant 64 : i32
    %464 = tpu.dynamic_rotate %463 by %c64_i32_125 dim 1 : vector<8x128xf32>, i32 -> vector<8x128xf32>
    %465 = arith.mulf %463, %464 : vector<8x128xf32>
    %466 = vector.extract_strided_slice %465 {offsets = [0, 0], sizes = [8, 32], strides = [1, 1]} : vector<8x128xf32> to vector<8x32xf32>
    %467 = vector.extract_strided_slice %463 {offsets = [0, 32], sizes = [8, 32], strides = [1, 1]} : vector<8x128xf32> to vector<8x32xf32>
    %468 = vector.extract_strided_slice %463 {offsets = [0, 96], sizes = [8, 32], strides = [1, 1]} : vector<8x128xf32> to vector<8x32xf32>
    %469 = arith.mulf %467, %399 : vector<8x32xf32>
    %470 = arith.addf %469, %466 : vector<8x32xf32>
    %471 = math.tanh %470 : vector<8x32xf32>
    %472 = arith.mulf %468, %471 : vector<8x32xf32>
    %cst_126 = arith.constant dense<0.000000e+00> : vector<8xf32>
    %473 = vector.multi_reduction <add>, %472, %cst_126 [1] : vector<8x32xf32> to vector<8xf32>
    %474 = vector.shape_cast %473 : vector<8xf32> to vector<8x1xf32>
    %cst_127 = arith.constant 3.200000e+01 : f32
    %475 = vector.broadcast %cst_127 : f32 to vector<8x1xf32>
    %476 = arith.divf %474, %475 : vector<8x1xf32>
    %477 = arith.mulf %472, %472 : vector<8x32xf32>
    %cst_128 = arith.constant dense<0.000000e+00> : vector<8xf32>
    %478 = vector.multi_reduction <add>, %477, %cst_128 [1] : vector<8x32xf32> to vector<8xf32>
    %479 = vector.shape_cast %478 : vector<8xf32> to vector<8x1xf32>
    %cst_129 = arith.constant 3.200000e+01 : f32
    %480 = vector.broadcast %cst_129 : f32 to vector<8x1xf32>
    %481 = arith.divf %479, %480 : vector<8x1xf32>
    %482 = arith.mulf %476, %476 : vector<8x1xf32>
    %483 = arith.subf %481, %482 : vector<8x1xf32>
    %cst_130 = arith.constant 9.99999974E-6 : f32
    %484 = vector.broadcast %cst_130 : f32 to vector<8x1xf32>
    %485 = arith.addf %483, %484 : vector<8x1xf32>
    %486 = math.rsqrt %485 : vector<8x1xf32>
    %487 = vector.broadcast %476 : vector<8x1xf32> to vector<8x32xf32>
    %488 = arith.subf %472, %487 : vector<8x32xf32>
    %489 = vector.broadcast %486 : vector<8x1xf32> to vector<8x32xf32>
    %490 = arith.mulf %488, %489 : vector<8x32xf32>
    %491 = vector.broadcast %12 : vector<1x32xf32> to vector<8x32xf32>
    %492 = arith.mulf %490, %491 : vector<8x32xf32>
    %493 = vector.broadcast %14 : vector<1x32xf32> to vector<8x32xf32>
    %494 = arith.addf %492, %493 : vector<8x32xf32>
    %495 = arith.truncf %494 : vector<8x32xf32> to vector<8x32xbf16>
    %cst_131 = arith.constant dense<0.000000e+00> : vector<8x128xf32>
    %496 = tpu.matmul %495, %7, %cst_131 {dimension_numbers = #tpu.dot_dimension_numbers<[1], [0], [0], [1], [0, 0, 1, 1], [], []>} : vector<8x32xbf16>, vector<32x128xbf16>, vector<8x128xf32> -> vector<8x128xf32>
    %497 = arith.truncf %449 : vector<8x32xf32> to vector<8x32xbf16>
    %cst_132 = arith.constant dense<0.000000e+00> : vector<8x128xf32>
    %498 = tpu.matmul %497, %9, %cst_132 {dimension_numbers = #tpu.dot_dimension_numbers<[1], [0], [0], [1], [0, 0, 1, 1], [], []>} : vector<8x32xbf16>, vector<32x128xbf16>, vector<8x128xf32> -> vector<8x128xf32>
    %499 = arith.addf %496, %498 : vector<8x128xf32>
    %500 = vector.broadcast %11 : vector<1x128xf32> to vector<8x128xf32>
    %501 = arith.addf %499, %500 : vector<8x128xf32>
    %502 = arith.negf %501 : vector<8x128xf32>
    %503 = math.exp %502 : vector<8x128xf32>
    %cst_133 = arith.constant 1.000000e+00 : f32
    %504 = vector.broadcast %cst_133 : f32 to vector<8x128xf32>
    %505 = arith.addf %504, %503 : vector<8x128xf32>
    %506 = arith.divf %504, %505 : vector<8x128xf32>
    %cst_134 = arith.constant 2.000000e+00 : f32
    %507 = vector.broadcast %cst_134 : f32 to vector<8x128xf32>
    %508 = arith.mulf %507, %506 : vector<8x128xf32>
    %cst_135 = arith.constant 1.000000e+00 : f32
    %509 = vector.broadcast %cst_135 : f32 to vector<8x128xf32>
    %510 = arith.subf %508, %509 : vector<8x128xf32>
    %511 = arith.select %5, %510, %506 : vector<8x128xi1>, vector<8x128xf32>
    %c64_i32_136 = arith.constant 64 : i32
    %512 = tpu.dynamic_rotate %511 by %c64_i32_136 dim 1 : vector<8x128xf32>, i32 -> vector<8x128xf32>
    %513 = arith.mulf %511, %512 : vector<8x128xf32>
    %514 = vector.extract_strided_slice %513 {offsets = [0, 0], sizes = [8, 32], strides = [1, 1]} : vector<8x128xf32> to vector<8x32xf32>
    %515 = vector.extract_strided_slice %511 {offsets = [0, 32], sizes = [8, 32], strides = [1, 1]} : vector<8x128xf32> to vector<8x32xf32>
    %516 = vector.extract_strided_slice %511 {offsets = [0, 96], sizes = [8, 32], strides = [1, 1]} : vector<8x128xf32> to vector<8x32xf32>
    %517 = arith.mulf %515, %447 : vector<8x32xf32>
    %518 = arith.addf %517, %514 : vector<8x32xf32>
    %519 = math.tanh %518 : vector<8x32xf32>
    %520 = arith.mulf %516, %519 : vector<8x32xf32>
    %521 = vector.extract_strided_slice %19 {offsets = [56, 0], sizes = [8, 128], strides = [1, 1]} : vector<64x128xf32> to vector<8x128xf32>
    %522 = arith.truncf %472 : vector<8x32xf32> to vector<8x32xbf16>
    %cst_137 = arith.constant dense<0.000000e+00> : vector<8x128xf32>
    %523 = tpu.matmul %522, %8, %cst_137 {dimension_numbers = #tpu.dot_dimension_numbers<[1], [0], [0], [1], [0, 0, 1, 1], [], []>} : vector<8x32xbf16>, vector<32x128xbf16>, vector<8x128xf32> -> vector<8x128xf32>
    %524 = arith.addf %521, %523 : vector<8x128xf32>
    %525 = arith.negf %524 : vector<8x128xf32>
    %526 = math.exp %525 : vector<8x128xf32>
    %cst_138 = arith.constant 1.000000e+00 : f32
    %527 = vector.broadcast %cst_138 : f32 to vector<8x128xf32>
    %528 = arith.addf %527, %526 : vector<8x128xf32>
    %529 = arith.divf %527, %528 : vector<8x128xf32>
    %cst_139 = arith.constant 2.000000e+00 : f32
    %530 = vector.broadcast %cst_139 : f32 to vector<8x128xf32>
    %531 = arith.mulf %530, %529 : vector<8x128xf32>
    %cst_140 = arith.constant 1.000000e+00 : f32
    %532 = vector.broadcast %cst_140 : f32 to vector<8x128xf32>
    %533 = arith.subf %531, %532 : vector<8x128xf32>
    %534 = arith.select %5, %533, %529 : vector<8x128xi1>, vector<8x128xf32>
    %c64_i32_141 = arith.constant 64 : i32
    %535 = tpu.dynamic_rotate %534 by %c64_i32_141 dim 1 : vector<8x128xf32>, i32 -> vector<8x128xf32>
    %536 = arith.mulf %534, %535 : vector<8x128xf32>
    %537 = vector.extract_strided_slice %536 {offsets = [0, 0], sizes = [8, 32], strides = [1, 1]} : vector<8x128xf32> to vector<8x32xf32>
    %538 = vector.extract_strided_slice %534 {offsets = [0, 32], sizes = [8, 32], strides = [1, 1]} : vector<8x128xf32> to vector<8x32xf32>
    %539 = vector.extract_strided_slice %534 {offsets = [0, 96], sizes = [8, 32], strides = [1, 1]} : vector<8x128xf32> to vector<8x32xf32>
    %540 = arith.mulf %538, %470 : vector<8x32xf32>
    %541 = arith.addf %540, %537 : vector<8x32xf32>
    %542 = math.tanh %541 : vector<8x32xf32>
    %543 = arith.mulf %539, %542 : vector<8x32xf32>
    %cst_142 = arith.constant dense<0.000000e+00> : vector<8xf32>
    %544 = vector.multi_reduction <add>, %543, %cst_142 [1] : vector<8x32xf32> to vector<8xf32>
    %545 = vector.shape_cast %544 : vector<8xf32> to vector<8x1xf32>
    %cst_143 = arith.constant 3.200000e+01 : f32
    %546 = vector.broadcast %cst_143 : f32 to vector<8x1xf32>
    %547 = arith.divf %545, %546 : vector<8x1xf32>
    %548 = arith.mulf %543, %543 : vector<8x32xf32>
    %cst_144 = arith.constant dense<0.000000e+00> : vector<8xf32>
    %549 = vector.multi_reduction <add>, %548, %cst_144 [1] : vector<8x32xf32> to vector<8xf32>
    %550 = vector.shape_cast %549 : vector<8xf32> to vector<8x1xf32>
    %cst_145 = arith.constant 3.200000e+01 : f32
    %551 = vector.broadcast %cst_145 : f32 to vector<8x1xf32>
    %552 = arith.divf %550, %551 : vector<8x1xf32>
    %553 = arith.mulf %547, %547 : vector<8x1xf32>
    %554 = arith.subf %552, %553 : vector<8x1xf32>
    %cst_146 = arith.constant 9.99999974E-6 : f32
    %555 = vector.broadcast %cst_146 : f32 to vector<8x1xf32>
    %556 = arith.addf %554, %555 : vector<8x1xf32>
    %557 = math.rsqrt %556 : vector<8x1xf32>
    %558 = vector.broadcast %547 : vector<8x1xf32> to vector<8x32xf32>
    %559 = arith.subf %543, %558 : vector<8x32xf32>
    %560 = vector.broadcast %557 : vector<8x1xf32> to vector<8x32xf32>
    %561 = arith.mulf %559, %560 : vector<8x32xf32>
    %562 = vector.broadcast %12 : vector<1x32xf32> to vector<8x32xf32>
    %563 = arith.mulf %561, %562 : vector<8x32xf32>
    %564 = vector.broadcast %14 : vector<1x32xf32> to vector<8x32xf32>
    %565 = arith.addf %563, %564 : vector<8x32xf32>
    %566 = arith.truncf %565 : vector<8x32xf32> to vector<8x32xbf16>
    %cst_147 = arith.constant dense<0.000000e+00> : vector<8x128xf32>
    %567 = tpu.matmul %566, %7, %cst_147 {dimension_numbers = #tpu.dot_dimension_numbers<[1], [0], [0], [1], [0, 0, 1, 1], [], []>} : vector<8x32xbf16>, vector<32x128xbf16>, vector<8x128xf32> -> vector<8x128xf32>
    %568 = arith.truncf %520 : vector<8x32xf32> to vector<8x32xbf16>
    %cst_148 = arith.constant dense<0.000000e+00> : vector<8x128xf32>
    %569 = tpu.matmul %568, %9, %cst_148 {dimension_numbers = #tpu.dot_dimension_numbers<[1], [0], [0], [1], [0, 0, 1, 1], [], []>} : vector<8x32xbf16>, vector<32x128xbf16>, vector<8x128xf32> -> vector<8x128xf32>
    %570 = arith.addf %567, %569 : vector<8x128xf32>
    %571 = vector.broadcast %11 : vector<1x128xf32> to vector<8x128xf32>
    %572 = arith.addf %570, %571 : vector<8x128xf32>
    %573 = arith.negf %572 : vector<8x128xf32>
    %574 = math.exp %573 : vector<8x128xf32>
    %cst_149 = arith.constant 1.000000e+00 : f32
    %575 = vector.broadcast %cst_149 : f32 to vector<8x128xf32>
    %576 = arith.addf %575, %574 : vector<8x128xf32>
    %577 = arith.divf %575, %576 : vector<8x128xf32>
    %cst_150 = arith.constant 2.000000e+00 : f32
    %578 = vector.broadcast %cst_150 : f32 to vector<8x128xf32>
    %579 = arith.mulf %578, %577 : vector<8x128xf32>
    %cst_151 = arith.constant 1.000000e+00 : f32
    %580 = vector.broadcast %cst_151 : f32 to vector<8x128xf32>
    %581 = arith.subf %579, %580 : vector<8x128xf32>
    %582 = arith.select %5, %581, %577 : vector<8x128xi1>, vector<8x128xf32>
    %c64_i32_152 = arith.constant 64 : i32
    %583 = tpu.dynamic_rotate %582 by %c64_i32_152 dim 1 : vector<8x128xf32>, i32 -> vector<8x128xf32>
    %584 = arith.mulf %582, %583 : vector<8x128xf32>
    %585 = vector.extract_strided_slice %584 {offsets = [0, 0], sizes = [8, 32], strides = [1, 1]} : vector<8x128xf32> to vector<8x32xf32>
    %586 = vector.extract_strided_slice %582 {offsets = [0, 32], sizes = [8, 32], strides = [1, 1]} : vector<8x128xf32> to vector<8x32xf32>
    %587 = vector.extract_strided_slice %582 {offsets = [0, 96], sizes = [8, 32], strides = [1, 1]} : vector<8x128xf32> to vector<8x32xf32>
    %588 = arith.mulf %586, %518 : vector<8x32xf32>
    %589 = arith.addf %588, %585 : vector<8x32xf32>
    %590 = math.tanh %589 : vector<8x32xf32>
    %591 = arith.mulf %587, %590 : vector<8x32xf32>
    %cst_153 = arith.constant dense<0.000000e+00> : vector<8xf32>
    %592 = vector.multi_reduction <add>, %591, %cst_153 [1] : vector<8x32xf32> to vector<8xf32>
    %593 = vector.shape_cast %592 : vector<8xf32> to vector<8x1xf32>
    %cst_154 = arith.constant 3.200000e+01 : f32
    %594 = vector.broadcast %cst_154 : f32 to vector<8x1xf32>
    %595 = arith.divf %593, %594 : vector<8x1xf32>
    %596 = arith.mulf %591, %591 : vector<8x32xf32>
    %cst_155 = arith.constant dense<0.000000e+00> : vector<8xf32>
    %597 = vector.multi_reduction <add>, %596, %cst_155 [1] : vector<8x32xf32> to vector<8xf32>
    %598 = vector.shape_cast %597 : vector<8xf32> to vector<8x1xf32>
    %cst_156 = arith.constant 3.200000e+01 : f32
    %599 = vector.broadcast %cst_156 : f32 to vector<8x1xf32>
    %600 = arith.divf %598, %599 : vector<8x1xf32>
    %601 = arith.mulf %595, %595 : vector<8x1xf32>
    %602 = arith.subf %600, %601 : vector<8x1xf32>
    %cst_157 = arith.constant 9.99999974E-6 : f32
    %603 = vector.broadcast %cst_157 : f32 to vector<8x1xf32>
    %604 = arith.addf %602, %603 : vector<8x1xf32>
    %605 = math.rsqrt %604 : vector<8x1xf32>
    %606 = vector.broadcast %595 : vector<8x1xf32> to vector<8x32xf32>
    %607 = arith.subf %591, %606 : vector<8x32xf32>
    %608 = vector.broadcast %605 : vector<8x1xf32> to vector<8x32xf32>
    %609 = arith.mulf %607, %608 : vector<8x32xf32>
    %610 = vector.broadcast %13 : vector<1x32xf32> to vector<8x32xf32>
    %611 = arith.mulf %609, %610 : vector<8x32xf32>
    %612 = vector.broadcast %15 : vector<1x32xf32> to vector<8x32xf32>
    %613 = arith.addf %611, %612 : vector<8x32xf32>
    %614 = arith.truncf %613 : vector<8x32xf32> to vector<8x32xbf16>
    %c0_158 = arith.constant 0 : index
    %c0_159 = arith.constant 0 : index
    %615 = vector.load %arg11[%c0_158, %c0_159] : memref<32x128xbf16, #tpu.memory_space<vmem>>, vector<32x128xbf16>
    %cst_160 = arith.constant dense<0.000000e+00> : vector<8x128xf32>
    %616 = tpu.matmul %614, %615, %cst_160 {dimension_numbers = #tpu.dot_dimension_numbers<[1], [0], [0], [1], [0, 0, 1, 1], [], []>} : vector<8x32xbf16>, vector<32x128xbf16>, vector<8x128xf32> -> vector<8x128xf32>
    %c0_161 = arith.constant 0 : index
    %c0_162 = arith.constant 0 : index
    %617 = vector.load %arg12[%c0_161, %c0_162] : memref<1x128xf32, #tpu.memory_space<vmem>>, vector<1x128xf32>
    %618 = vector.broadcast %617 : vector<1x128xf32> to vector<8x128xf32>
    %619 = arith.addf %616, %618 : vector<8x128xf32>
    %cst_163 = arith.constant 0.000000e+00 : f32
    %620 = vector.broadcast %cst_163 : f32 to vector<8x128xf32>
    %621 = arith.maximumf %619, %620 : vector<8x128xf32>
    %622 = arith.truncf %621 : vector<8x128xf32> to vector<8x128xbf16>
    %c0_164 = arith.constant 0 : index
    %c0_165 = arith.constant 0 : index
    %623 = vector.load %arg13[%c0_164, %c0_165] : memref<128x128xbf16, #tpu.memory_space<vmem>>, vector<128x128xbf16>
    %cst_166 = arith.constant dense<0.000000e+00> : vector<8x128xf32>
    %624 = tpu.matmul %622, %623, %cst_166 {dimension_numbers = #tpu.dot_dimension_numbers<[1], [0], [0], [1], [0, 0, 1, 1], [], []>} : vector<8x128xbf16>, vector<128x128xbf16>, vector<8x128xf32> -> vector<8x128xf32>
    %c0_167 = arith.constant 0 : index
    %c0_168 = arith.constant 0 : index
    %625 = vector.load %arg14[%c0_167, %c0_168] : memref<1x128xf32, #tpu.memory_space<vmem>>, vector<1x128xf32>
    %626 = vector.broadcast %625 : vector<1x128xf32> to vector<8x128xf32>
    %627 = arith.addf %624, %626 : vector<8x128xf32>
    %c0_169 = arith.constant 0 : index
    %c0_170 = arith.constant 0 : index
    %628 = vector.load %arg15[%c0_169, %c0_170] : memref<8x128xf32, #tpu.memory_space<vmem>>, vector<8x128xf32>
    tpu.vector_store %arg15[%c0_169, %c0_170], %627 {strides = array<i32>} : memref<8x128xf32, #tpu.memory_space<vmem>>, vector<8x128xf32>,
    return
  }
}

</mosaic_0001>

<bundles_post_ra>
// kernel: stock_price_lstm_forward.1
= control target key start
LH: loop header
LB: loop body
LE: loop exit
PB: predicated region body
PF: predicated region fallthrough
CT: control target
= control target key end

     0   :  { %20 = vsyncpa [#allocation3], 0  ;;  %s3765_s0 = inlined_call_operand.vmem [shape: bf16[64,4], index: 0, kind: input, shape index: {}]   ;;  %s3766_s1 = inlined_call_operand.hbm [shape: bf16[4,128], index: 1, kind: input, shape index: {}]   ;;  %s3767_s2 = inlined_call_operand.vmem [shape: bf16[32,128], index: 2, kind: input, shape index: {}]   ;;  %s3768_s3 = inlined_call_operand.hbm [shape: f32[1,128], index: 3, kind: input, shape index: {}]   ;;  %s3769_s4 = inlined_call_operand.hbm [shape: f32[1,32], index: 4, kind: input, shape index: {}]   ;;  %s3770_s5 = inlined_call_operand.hbm [shape: f32[1,32], index: 5, kind: input, shape index: {}]   ;;  %s3771_s6 = inlined_call_operand.vmem [shape: bf16[32,128], index: 6, kind: input, shape index: {}]   ;;  %s3772_s7 = inlined_call_operand.hbm [shape: bf16[32,128], index: 7, kind: input, shape index: {}]   ;;  %s3773_s8 = inlined_call_operand.vmem [shape: f32[1,128], index: 8, kind: input, shape index: {}]   ;;  %s3774_s9 = inlined_call_operand.hbm [shape: f32[1,32], index: 9, kind: input, shape index: {}]   ;;  %s3775_s10 = inlined_call_operand.hbm [shape: f32[1,32], index: 10, kind: input, shape index: {}]   ;;  %s3776_s11 = inlined_call_operand.hbm [shape: bf16[32,128], index: 11, kind: input, shape index: {}]   ;;  %s3777_s12 = inlined_call_operand.hbm [shape: f32[1,128], index: 12, kind: input, shape index: {}]   ;;  %s3778_s13 = inlined_call_operand.vmem [shape: bf16[128,128], index: 13, kind: input, shape index: {}]   ;;  %s3779_s14 = inlined_call_operand.hbm [shape: f32[1,128], index: 14, kind: input, shape index: {}]   ;;  %s3780_s15 = inlined_call_operand.vmem [shape: f32[8,128], index: 15, kind: output, shape index: {}]  }
   0x1   :  { %21 = vsyncpa [#allocation5], 0 }
   0x2   :  { %22 = vsyncpa [#allocation8], 0 }
   0x3   :  { %23 = vsyncpa [#allocation11], 0 }
   0x4   :  { %24 = vsyncpa [#allocation14], 0 }
   0x5   :  { %25 = vsyncpa [#allocation17], 0  ;;  %s3100_s18 = smov [#allocation4]   ;;  %s3101_s20 = smov [#allocation7]  }
   0x6   :  { %s46_s19 = sshll.u32 %s3100_s18, 4  ;;  %s66_s21 = sshll.u32 %s3101_s20, 4  ;;  %s47_s19 = int_to_ptr.vmem [resolvable:$true] %s46_s19  ;;  %s67_s21 = int_to_ptr.vmem [resolvable:$true] %s66_s21 }
   0x7   :  { %s2896_s22 = scalar_lea.vmem %s47_s19, 16  ;;  %s2900_s23 = scalar_lea.vmem %s47_s19, 32 }
   0x8   :  { %p2897_p0 = scmp.ne.s32.totalorder %s47_s19, %s2896_s22  ;;  %p2901_p1 = scmp.lt.s32.totalorder %s47_s19, %s47_s19 }
   0x9   :  { %p2902_p2 = scmp.lt.s32.totalorder %s2900_s23, %s2896_s22 }
   0xb   :  { %p2903_p3 = por %p2902_p2, %p2901_p1 }
   0xd   :  { %p2904_p4 = pnand %p2903_p3, %p2897_p0 }
   0xf   :  { %2907 = shalt.err (!%p2904_p4)
}
  0x10   :  { %49 = dma.hbm_to_vmem [thread:$0]  %s3768_s3, 16, %s47_s19, [#allocation5]  }
  0x11   :  { %s2916_s26 = scalar_lea.vmem %s67_s21, 16  ;;  %s2920_s27 = scalar_lea.vmem %s67_s21, 32 }
  0x12   :  { %p2917_p5 = scmp.ne.s32.totalorder %s67_s21, %s2916_s26  ;;  %p2921_p6 = scmp.lt.s32.totalorder %s67_s21, %s67_s21 }
  0x13   :  { %p2922_p7 = scmp.lt.s32.totalorder %s2920_s27, %s2916_s26 }
  0x15   :  { %p2923_p8 = por %p2922_p7, %p2921_p6 }
  0x17   :  { %p2924_p9 = pnand %p2923_p8, %p2917_p5 }
  0x19   :  { %2927 = shalt.err (!%p2924_p9)
}
  0x1a   :  { %69 = dma.hbm_to_vmem [thread:$0]  %s3770_s5, 16, %s67_s21, [#allocation8]  }
  0x1b   :  { %s3102_s30 = smov [#allocation10]  }
  0x1c   :  { %s92_s16 = sshll.u32 %s3102_s30, 4  ;;  %s93_s16 = int_to_ptr.vmem [resolvable:$true] %s92_s16 }
  0x1d   :  { %s2936_s17 = scalar_lea.vmem %s93_s16, 16  ;;  %s2940_s18 = scalar_lea.vmem %s93_s16, 32 }
  0x1e   :  { %p2937_p10 = scmp.ne.s32.totalorder %s93_s16, %s2936_s17  ;;  %p2941_p11 = scmp.lt.s32.totalorder %s93_s16, %s93_s16 }
  0x1f   :  { %p2942_p12 = scmp.lt.s32.totalorder %s2940_s18, %s2936_s17 }
  0x21   :  { %p2943_p13 = por %p2942_p12, %p2941_p11 }
  0x23   :  { %p2944_p0 = pnand %p2943_p13, %p2937_p10 }
  0x25   :  { %2947 = shalt.err (!%p2944_p0)
}
  0x26   :  { %95 = dma.hbm_to_vmem [thread:$0]  %s3774_s9, 16, %s93_s16, [#allocation11]  }
  0x27   :  { %s3103_s20 = smov [#allocation13]   ;;  %s3104_s23 = smov [#allocation2]  }
  0x28   :  { %s111_s22 = sshll.u32 %s3103_s20, 4  ;;  %s34_s5 = sshll.u32 %s3104_s23, 4  ;;  %s112_s22 = int_to_ptr.vmem [resolvable:$true] %s111_s22  ;;  %s35_s5 = int_to_ptr.vmem [resolvable:$true] %s34_s5 }
  0x29   :  { %s2956_s21 = scalar_lea.vmem %s112_s22, 256  ;;  %p2961_p2 = scmp.lt.s32.totalorder %s112_s22, %s112_s22 }
  0x2a   :  { %p2957_p1 = scmp.ne.s32.totalorder %s112_s22, %s2956_s21  ;;  %p2962_p3 = scmp.lt.s32.totalorder %s2956_s21, %s2956_s21 }
  0x2c   :  { %p2963_p4 = por %p2962_p3, %p2961_p2 }
  0x2e   :  { %p2964_p5 = pnand %p2963_p4, %p2957_p1 }
  0x30   :  { %2967 = shalt.err (!%p2964_p5)
}
  0x31   :  { %s3105_s24 = smov 64   ;;  %s3106_s25 = smov 4  }
  0x32   :  { %117 = dma.hbm_to_vmem [thread:$0]  %s3776_s11, 256, %s112_s22, [#allocation14], %s3105_s24, %s3105_s24, %s3106_s25  }
  0x33   :  { %s2976_s9 = scalar_lea.vmem %s35_s5, 32  ;;  %p2981_p7 = scmp.lt.s32.totalorder %s35_s5, %s35_s5 }
  0x34   :  { %p2977_p6 = scmp.ne.s32.totalorder %s35_s5, %s2976_s9  ;;  %p2982_p8 = scmp.lt.s32.totalorder %s2976_s9, %s2976_s9 }
  0x36   :  { %p2983_p9 = por %p2982_p8, %p2981_p7 }
  0x38   :  { %p2984_p10 = pnand %p2983_p9, %p2977_p6 }
  0x3a   :  { %2987 = shalt.err (!%p2984_p10)
}
  0x3b   :  { %37 = dma.hbm_to_vmem [thread:$0]  %s3766_s1, 32, %s35_s5, [#allocation3]  }
  0x3c   :  { %s3107_s30 = smov [#allocation6]   ;;  %s3108_s17 = smov [#allocation9]  }
  0x3d   :  { %s56_s16 = sshll.u32 %s3107_s30, 4  ;;  %s77_s18 = sshll.u32 %s3108_s17, 4  ;;  %s57_s16 = int_to_ptr.vmem [resolvable:$true] %s56_s16  ;;  %s78_s18 = int_to_ptr.vmem [resolvable:$true] %s77_s18 }
  0x3e   :  { %s2996_s3 = scalar_lea.vmem %s57_s16, 16  ;;  %s3000_s11 = scalar_lea.vmem %s57_s16, 32 }
  0x3f   :  { %p2997_p11 = scmp.ne.s32.totalorder %s57_s16, %s2996_s3  ;;  %p3001_p12 = scmp.lt.s32.totalorder %s57_s16, %s57_s16 }
  0x40   :  { %p3002_p13 = scmp.lt.s32.totalorder %s3000_s11, %s2996_s3 }
  0x42   :  { %p3003_p0 = por %p3002_p13, %p3001_p12 }
  0x44   :  { %p3004_p1 = pnand %p3003_p0, %p2997_p11 }
  0x46   :  { %3007 = shalt.err (!%p3004_p1)
}
  0x47   :  { %59 = dma.hbm_to_vmem [thread:$0]  %s3769_s4, 16, %s57_s16, [#allocation5]  }
  0x48   :  { %s3016_s22 = scalar_lea.vmem %s78_s18, 256  ;;  %p3021_p3 = scmp.lt.s32.totalorder %s78_s18, %s78_s18 }
  0x49   :  { %p3017_p2 = scmp.ne.s32.totalorder %s78_s18, %s3016_s22  ;;  %p3022_p4 = scmp.lt.s32.totalorder %s3016_s22, %s3016_s22 }
  0x4b   :  { %p3023_p5 = por %p3022_p4, %p3021_p3 }
  0x4d   :  { %p3024_p6 = pnand %p3023_p5, %p3017_p2 }
  0x4f   :  { %3027 = shalt.err (!%p3024_p6)
}
  0x50   :  { %83 = dma.hbm_to_vmem [thread:$0]  %s3772_s7, 256, %s78_s18, [#allocation8], %s3105_s24, %s3105_s24, %s3106_s25  }
  0x51   :  { %s3109_s5 = smov [#allocation12]   ;;  %s3110_s26 = smov [#allocation15]  }
  0x52   :  { %s102_s21 = sshll.u32 %s3109_s5, 4  ;;  %s124_s4 = sshll.u32 %s3110_s26, 4  ;;  %s103_s21 = int_to_ptr.vmem [resolvable:$true] %s102_s21  ;;  %s125_s4 = int_to_ptr.vmem [resolvable:$true] %s124_s4 }
  0x53   :  { %s3036_s27 = scalar_lea.vmem %s103_s21, 16  ;;  %s3040_s9 = scalar_lea.vmem %s103_s21, 32 }
  0x54   :  { %p3037_p7 = scmp.ne.s32.totalorder %s103_s21, %s3036_s27  ;;  %p3041_p8 = scmp.lt.s32.totalorder %s103_s21, %s103_s21 }
  0x55   :  { %p3042_p9 = scmp.lt.s32.totalorder %s3040_s9, %s3036_s27 }
  0x57   :  { %p3043_p10 = por %p3042_p9, %p3041_p8 }
  0x59   :  { %p3044_p11 = pnand %p3043_p10, %p3037_p7 }
  0x5b   :  { %3047 = shalt.err (!%p3044_p11)
}
  0x5c   :  { %105 = dma.hbm_to_vmem [thread:$0]  %s3775_s10, 16, %s103_s21, [#allocation11]  }
  0x5d   :  { %s3056_s30 = scalar_lea.vmem %s125_s4, 16  ;;  %s3060_s7 = scalar_lea.vmem %s125_s4, 32 }
  0x5e   :  { %p3057_p12 = scmp.ne.s32.totalorder %s125_s4, %s3056_s30  ;;  %p3061_p13 = scmp.lt.s32.totalorder %s125_s4, %s125_s4 }
  0x5f   :  { %p3062_p0 = scmp.lt.s32.totalorder %s3060_s7, %s3056_s30 }
  0x61   :  { %p3063_p1 = por %p3062_p0, %p3061_p13 }
  0x63   :  { %p3064_p2 = pnand %p3063_p1, %p3057_p12 }
  0x65   :  { %3067 = shalt.err (!%p3064_p2)
}
  0x66   :  { %127 = dma.hbm_to_vmem [thread:$0]  %s3777_s12, 16, %s125_s4, [#allocation14]  }
  0x67   :  { %s3111_s17 = smov [#allocation16]  }
  0x68   :  { %s136_s18 = sshll.u32 %s3111_s17, 4  ;;  %s137_s18 = int_to_ptr.vmem [resolvable:$true] %s136_s18 }
  0x69   :  { %s3076_s3 = scalar_lea.vmem %s137_s18, 16  ;;  %s3080_s11 = scalar_lea.vmem %s137_s18, 32 }
  0x6a   :  { %p3077_p3 = scmp.ne.s32.totalorder %s137_s18, %s3076_s3  ;;  %p3081_p4 = scmp.lt.s32.totalorder %s137_s18, %s137_s18 }
  0x6b   :  { %p3082_p5 = scmp.lt.s32.totalorder %s3080_s11, %s3076_s3 }
  0x6d   :  { %p3083_p6 = por %p3082_p5, %p3081_p4 }
  0x6f   :  { %p3084_p7 = pnand %p3083_p6, %p3077_p3 }
  0x71   :  { %3087 = shalt.err (!%p3084_p7)
}
  0x72   :  { %139 = dma.hbm_to_vmem [thread:$0]  %s3779_s14, 16, %s137_s18, [#allocation17]  }
  0x73   :  { %3088 = dma.done.wait [#allocation3], 32  }
  0x74   :  { %3089 = vsyncadd [#allocation3], 4294967264 }
  0x75   :  { %3090 = dma.done.wait [#allocation5], 32  }
  0x76   :  { %3091 = vsyncadd [#allocation5], 4294967264 }
  0x77   :  { %3092 = dma.done.wait [#allocation8], 272  }
  0x78   :  { %3093 = vsyncadd [#allocation8], 4294967024 }
  0x79   :  { %3094 = dma.done.wait [#allocation11], 32  }
  0x7a   :  { %3095 = vsyncadd [#allocation11], 4294967264 }
  0x7b   :  { %3096 = dma.done.wait [#allocation14], 272  }
  0x7c   :  { %3097 = vsyncadd [#allocation14], 4294967024 }
  0x7d   :  { %3098 = dma.done.wait [#allocation17], 16  }
  0x7e   :  { %3099 = vsyncadd [#allocation17], 4294967280  ;;  %v3112_v0 = vmov 0.0   ;;  %vm3113_vm0 = vmmov 0   ;;  %vm242_vm1 = vcmask 1041408   ;;  %vm229_vm2 = vcmask 31744  }
  0x7f   :  { %2533 = vmatprep.subr.bf16.mxu1 %v3112_v0  ;;  %2537 = vmatprep.mubr.msk.bf16.mxu1 %vm3113_vm0, %v3112_v0  ;;  %v176_v1 = vld [vmem:[#allocation2] sm:$0x3]  ;;  %v2748_v4 = vld [vmem:[%s3765_s0 + $0x8] sm:$0xff]   ;;  %v2750_v6 = vld [vmem:[%s3765_s0 + $0x10] sm:$0xff]   ;;  %v3114_v9 = vmov 0   ;;  %v171_v35 = vlaneseq  ;;  %vm323_vm6 = vcmask 261120  }
  0x80   :  { %2729 = vmatprep.subr.msk.bf16.mxu0 %vm242_vm1, %v176_v1  ;;  %v244_v2 = vsel %vm242_vm1, %v176_v1, 0  ;;  %v2747_v3 = vld [vmem:[%s3765_s0] sm:$0xff]   ;;  %v3247_v5 = vld [vmem:[%s3767_s2 + $0x8] sm:$0xff]   ;;  %v2751_v8 = vld [vmem:[%s3765_s0 + $0x18] sm:$0xff]   ;;  %s3115_s0 = smov 32   ;;  %s3116_s28 = smov 96  }
  0x81   :  { %2500 = vmatpush3.bf16.msra.mxu0 %v244_v2  ;;  %2501 = vmatprep.mubr.msk.bf16.mxu0 %vm229_vm2, %v2747_v3  ;;  %v3259_v7 = vld [vmem:[%s3767_s2] sm:$0xff]   ;;  %v172_v36 = vand.u32 127, %v171_v35  ;;  %v3312_v59 = vld [vmem:[#allocation9 + $0x8] sm:$0xff]   ;;  %v3317_v60 = vld [vmem:[%s3771_s6 + $0x8] sm:$0xff]  }
  0x82   :  { %2509 = vmatprep.subr.bf16.mxu0 %v3112_v0  ;;  %2534 = vmatpush3.bf16.msra.mxu1 %v3247_v5  ;;  %v2323_v10 = vld [vmem:[#allocation4] ss:$0 sm:$0xff]  ;;  %v2337_v57 = vld [vmem:[#allocation7] ss:$0 sm:$0xff]  ;;  %v2336_v58 = vld [vmem:[#allocation6] ss:$0 sm:$0xff] }
  0x83   :  { %2535 = vmatprep.subr.bf16.mxu1 %v3112_v0  ;;  %vm173_vm3 = vcmp.ge.s32.totalorder %v172_v36, 64  ;;  %vm174_vm4 = vcmp.lt.s32.totalorder %v172_v36, 96  ;;  %v3320_v61 = vld [vmem:[#allocation9] sm:$0xff]   ;;  %v3328_v62 = vld [vmem:[%s3771_s6] sm:$0xff]  }
  0x84   :  { %2502 = vmatmul.mubr.msk.bf16.vlgmr.msra.gmra.mxu0 %vm229_vm2, %v2748_v4  ;;  %vm3290_vm5 = vmand %vm173_vm3, %vm174_vm4 }
  0x85   :  { %2510 = vmatpush3.bf16.msra.mxu0 %v3247_v5  ;;  %2505 = vmatprep.mubr.msk.bf16.mxu0 %vm229_vm2, %v2750_v6 }
  0x86   :  { %2511 = vmatprep.subr.bf16.mxu0 %v3112_v0  ;;  %2536 = vmatpush3.bf16.msra.mxu1 %v3259_v7 }
  0x87   :  { %2549 = vmatprep.subr.bf16.mxu1 %v3112_v0 }
  0x89   :  { %2512 = vmatpush3.bf16.msra.mxu0 %v3259_v7 }
  0x8a   :  { %2517 = vmatprep.subr.bf16.mxu0 %v3112_v0 }
  0x8c   :  { %2506 = vmatmul.mubr.msk.bf16.gmra.mxu0 %vm229_vm2, %v2751_v8 }
  0x8d   :  { %2513 = vmatprep.mubr.msk.bf16.mxu0 %vm3113_vm0, %v3112_v0 }
  0x94   :  { %2514 = vmatmul.mubr.bf16.vlgmr.msra.gmra.mxu0 %v3114_v9 }
  0x95   :  { %2521 = vmatprep.mubr.msk.bf16.mxu0 %vm3113_vm0, %v3112_v0  ;;  %2518 = vmatpush3.bf16.msra.mxu0 %v3312_v59 }
  0x96   :  { %2519 = vmatprep.subr.bf16.mxu0 %v3112_v0 }
  0x99   :  { %2520 = vmatpush3.bf16.msra.mxu0 %v3320_v61 }
  0x9a   :  { %2525 = vmatprep.subr.bf16.mxu0 %v3112_v0 }
  0x9c   :  { %2522 = vmatmul.mubr.bf16.vlgmr.msra.gmra.mxu0 %v3114_v9 }
  0x9d   :  { %2526 = vmatpush3.bf16.msra.mxu0 %v3317_v60  ;;  %2529 = vmatprep.mubr.msk.bf16.mxu0 %vm3113_vm0, %v3112_v0 }
  0x9e   :  { %2527 = vmatprep.subr.bf16.mxu0 %v3112_v0 }
  0xa1   :  { %2528 = vmatpush3.bf16.msra.mxu0 %v3328_v62 }
  0xa2   :  { %2541 = vmatprep.subr.bf16.mxu0 %v3112_v0 }
 0x144   :  { %v2503_v11 = vpop.f32.mrf.mxu0 }
 0x145   :  { %v3276_v12 = vadd.f32 %v2503_v11, %v2323_v10 }
 0x146   :  { %v280_v13 = vpop.f32.mrf.mxu0 }
 0x147   :  { %v281_v25 = vadd.f32 %v2323_v10, %v280_v13 }
 0x148   :  { %v2504_v14 = vpop.f32.mrf.mxu0 }
 0x149   :  { %v3278_v15 = vadd.f32 %v2504_v14, %v2323_v10 }
 0x14a   :  { %v283_v16 = vpop.f32.mrf.mxu0 }
 0x14b   :  { %v3280_v17 = vadd.f32 %v2323_v10, %v283_v16 }
 0x14c   :  { %v2507_v18 = vpop.f32.mrf.mxu0 }
 0x14d   :  { %v3282_v19 = vadd.f32 %v2507_v18, %v2323_v10 }
 0x14e   :  { %v296_v20 = vpop.f32.mrf.mxu0 }
 0x14f   :  { %v3284_v21 = vadd.f32 %v2323_v10, %v296_v20 }
 0x150   :  { %v2508_v22 = vpop.f32.mrf.mxu0 }
 0x151   :  { %v3286_v23 = vadd.f32 %v2508_v22, %v2323_v10 }
 0x152   :  { %v299_v24 = vpop.f32.mrf.mxu0 }
 0x153   :  { %v3288_v26 = vadd.f32 %v2323_v10, %v299_v24 }
 0x154   :  { %v361_v27 = vpop.f32.mrf.mxu0 }
 0x155   :  { %v367_v28 = vadd.f32 %v361_v27, %v281_v25 }
 0x156   :  { %v2515_v29 = vpop.f32.mrf.mxu0 }
 0x157   :  { %v2334_v30 = vmul.f32 -1.442695, %v367_v28 }
 0x158   :  { %v364_v31 = vpop.f32.mrf.mxu0 }
 0x159   :  { %2767 = vpow2.f32 %v2334_v30 }
 0x15a   :  { %v2516_v32 = vpop.f32.mrf.mxu0 }
 0x166   :  { %v2768_v33 = vpop.eup %2767 }
 0x167   :  { %v371_v34 = vadd.f32 1.0, %v2768_v33 }
 0x169   :  { %2769 = vrcp.f32 %v371_v34 }
 0x176   :  { %v2770_v37 = vpop.eup %2769 }
 0x177   :  { %v374_v38 = vmul.f32 2.0, %v2770_v37 }
 0x179   :  { %v2335_v40 = vadd.f32 -1.0, %v374_v38 }
 0x17b   :  { %v376_v41 = vsel %vm3290_vm5, %v2335_v40, %v2770_v37 }
 0x17c   :  { %377 = vrot.lane.b32.xlu0 %v376_v41, %s3105_s24  ;;  %v380_v44 = vmul.f32 0.0, %v376_v41 }
 0x1ee   :  { %v378_v42 = vpop.permute.xlu0 %377 }
 0x1ef   :  { %v379_v43 = vmul.f32 %v378_v42, %v376_v41 }
 0x1f1   :  { %382 = vrot.lane.b32.xlu0 %v379_v43, %s3115_s0 }
 0x263   :  { %v383_v45 = vpop.permute.xlu0 %382 }
 0x264   :  { %v3298_v46 = vadd.f32 %v383_v45, %v380_v44 }
 0x266   :  { %2771 = vtanh.f32 %v3298_v46 }
 0x273   :  { %v2772_v47 = vpop.eup %2771 }
 0x274   :  { %388 = vrot.lane.b32.xlu1 %v2772_v47, %s3105_s24  ;;  %v3367_v47 = vld [vmem:[%s3773_s8] ss:$0 sm:$0xff] }
 0x2e6   :  { %v389_v48 = vpop.permute.xlu1 %388 }
 0x2e7   :  { %v391_v49 = vmul.f32 %v389_v48, %v376_v41 }
 0x2e9   :  { %393 = vrot.lane.b32.xlu1 %v391_v49, %s3115_s0  ;;  %v401_v50 = vmul.f32 %v391_v49, %v391_v49  ;;  %v576_v51 = vpack.c.bf16 %v391_v49, %v391_v49 }
 0x2eb   :  { %403 = vrot.lane.b32.xlu0 %v401_v50, %s3115_s0 }
 0x2ed   :  { %578 = vrot.lane.b32.xlu1 %v576_v51, %s3115_s0 }
 0x35b   :  { %v394_v52 = vpop.permute.xlu1 %393 }
 0x35c   :  { %v396_v53 = vsel %vm323_vm6, %v394_v52, 0.0 }
 0x35d   :  { %397 = vadd.xlane.f32.xlu0 %v396_v53  ;;  %v404_v54 = vpop.permute.xlu0 %403 }
 0x35e   :  { %v406_v55 = vsel %vm323_vm6, %v404_v54, 0.0 }
 0x35f   :  { %v579_v56 = vpop.permute.xlu1 %578  ;;  %407 = vadd.xlane.f32.xlu1 %v406_v55 }
 0x360   :  { %2538 = vmatmul.mubr.msk.bf16.vlgmr.msra.gmra.mxu1 %vm323_vm6, %v579_v56 }
 0x361   :  { %2553 = vmatprep.mubr.msk.bf16.mxu1 %vm3113_vm0, %v3112_v0  ;;  %2550 = vmatpush3.bf16.msra.mxu1 %v3317_v60 }
 0x362   :  { %2551 = vmatprep.subr.bf16.mxu1 %v3112_v0 }
 0x365   :  { %2552 = vmatpush3.bf16.msra.mxu1 %v3328_v62 }
 0x366   :  { %2565 = vmatprep.subr.bf16.mxu1 %v3112_v0 }
 0x370   :  { %430 = vrot.lane.b32.xlu1 %v2337_v57, %s3116_s28 }
 0x373   :  { %421 = vrot.lane.b32.xlu0 %v2336_v58, %s3116_s28 }
 0x3e6   :  { %v398_v63 = vpop.xlane.xlu0 %397 }
 0x3e7   :  { %v400_v1 = vmul.f32 0.03125, %v398_v63 }
 0x3e8   :  { %v408_v2 = vpop.xlane.xlu1 %407 }
 0x3e9   :  { %v410_v3 = vmul.f32 %v400_v1, %v400_v1  ;;  %v409_v4 = vmul.f32 0.03125, %v408_v2  ;;  %v414_v9 = vsub.f32 %v391_v49, %v400_v1 }
 0x3ea   :  { %v3341_v11 = vpop.permute.xlu0 %421 }
 0x3eb   :  { %v411_v6 = vsub.f32 %v409_v4, %v410_v3 }
 0x3ec   :  { %v3343_v14 = vpop.permute.xlu1 %430 }
 0x3ed   :  { %v412_v8 = vadd.f32 1e-05, %v411_v6 }
 0x3ef   :  { %2773 = vrsqrt.f32 %v412_v8 }
 0x3fc   :  { %v2774_v10 = vpop.eup %2773 }
 0x3fd   :  { %v415_v13 = vmul.f32 %v2774_v10, %v414_v9 }
 0x3ff   :  { %v424_v16 = vmul.f32 %v3341_v11, %v415_v13 }
 0x401   :  { %v433_v18 = vadd.f32 %v3343_v14, %v424_v16 }
 0x403   :  { %v434_v20 = vpack.c.bf16 %v433_v18, %v433_v18 }
 0x405   :  { %488 = vrot.lane.b32.xlu0 %v434_v20, %s3115_s0 }
 0x420   :  { %v617_v22 = vpop.f32.mrf.mxu1 }
 0x421   :  { %v623_v24 = vadd.f32 %v617_v22, %v3280_v17  ;;  %v481_v17 = vpop.f32.mrf.mxu0 }
 0x422   :  { %v2539_v25 = vpop.f32.mrf.mxu1 }
 0x423   :  { %v2347_v27 = vmul.f32 -1.442695, %v623_v24  ;;  %v2523_v37 = vpop.f32.mrf.mxu0 }
 0x424   :  { %v620_v28 = vpop.f32.mrf.mxu1 }
 0x425   :  { %2775 = vpow2.f32 %v2347_v27  ;;  %v484_v38 = vpop.f32.mrf.mxu0 }
 0x426   :  { %v2540_v29 = vpop.f32.mrf.mxu1 }
 0x427   :  { %v2524_v40 = vpop.f32.mrf.mxu0 }
 0x432   :  { %v2776_v30 = vpop.eup %2775 }
 0x433   :  { %v627_v31 = vadd.f32 1.0, %v2776_v30 }
 0x435   :  { %2777 = vrcp.f32 %v627_v31 }
 0x442   :  { %v2778_v32 = vpop.eup %2777 }
 0x443   :  { %v630_v33 = vmul.f32 2.0, %v2778_v32 }
 0x445   :  { %v2348_v34 = vadd.f32 -1.0, %v630_v33 }
 0x447   :  { %v632_v35 = vsel %vm3290_vm5, %v2348_v34, %v2778_v32 }
 0x448   :  { %633 = vrot.lane.b32.xlu1 %v632_v35, %s3105_s24  ;;  %v636_v43 = vmul.f32 %v632_v35, %v3298_v46 }
 0x477   :  { %v489_v36 = vpop.permute.xlu0 %488 }
 0x478   :  { %2530 = vmatmul.mubr.msk.bf16.vlgmr.msra.gmra.mxu0 %vm323_vm6, %v489_v36 }
 0x479   :  { %2542 = vmatpush3.bf16.msra.mxu0 %v3312_v59  ;;  %2545 = vmatprep.mubr.msk.bf16.mxu0 %vm3113_vm0, %v3112_v0 }
 0x47a   :  { %2543 = vmatprep.subr.bf16.mxu0 %v3112_v0 }
 0x47d   :  { %2544 = vmatpush3.bf16.msra.mxu0 %v3320_v61 }
 0x47e   :  { %2557 = vmatprep.subr.bf16.mxu0 %v3112_v0 }
 0x4ba   :  { %v634_v41 = vpop.permute.xlu1 %633 }
 0x4bb   :  { %v635_v42 = vmul.f32 %v634_v41, %v632_v35 }
 0x4bd   :  { %638 = vrot.lane.b32.xlu0 %v635_v42, %s3115_s0 }
 0x52f   :  { %v639_v44 = vpop.permute.xlu0 %638 }
 0x530   :  { %v3361_v45 = vadd.f32 %v639_v44, %v636_v43 }
 0x532   :  { %2779 = vtanh.f32 %v3361_v45 }
 0x538   :  { %v539_v48 = vpop.f32.mrf.mxu0 }
 0x539   :  { %v540_v49 = vadd.f32 %v539_v48, %v481_v17 }
 0x53a   :  { %v2531_v50 = vpop.f32.mrf.mxu0 }
 0x53b   :  { %v551_v51 = vadd.f32 %v3367_v47, %v540_v49 }
 0x53c   :  { %v542_v52 = vpop.f32.mrf.mxu0 }
 0x53d   :  { %v2344_v53 = vmul.f32 -1.442695, %v551_v51 }
 0x53e   :  { %v2532_v54 = vpop.f32.mrf.mxu0 }
 0x53f   :  { %v2780_v55 = vpop.eup %2779  ;;  %2781 = vpow2.f32 %v2344_v53 }
 0x540   :  { %644 = vrot.lane.b32.xlu1 %v2780_v55, %s3105_s24 }
 0x54c   :  { %v2782_v46 = vpop.eup %2781 }
 0x54d   :  { %v555_v56 = vadd.f32 1.0, %v2782_v46 }
 0x54f   :  { %2783 = vrcp.f32 %v555_v56 }
 0x55c   :  { %v2784_v57 = vpop.eup %2783 }
 0x55d   :  { %v558_v58 = vmul.f32 2.0, %v2784_v57 }
 0x55f   :  { %v2345_v63 = vadd.f32 -1.0, %v558_v58 }
 0x561   :  { %v560_v1 = vsel %vm3290_vm5, %v2345_v63, %v2784_v57 }
 0x562   :  { %561 = vrot.lane.b32.xlu0 %v560_v1, %s3105_s24  ;;  %v564_v18 = vmul.f32 0.0, %v560_v1 }
 0x5b2   :  { %v645_v2 = vpop.permute.xlu1 %644 }
 0x5b3   :  { %v647_v3 = vmul.f32 %v645_v2, %v632_v35 }
 0x5b5   :  { %649 = vrot.lane.b32.xlu1 %v647_v3, %s3115_s0  ;;  %v656_v4 = vmul.f32 %v647_v3, %v647_v3  ;;  %v792_v42 = vpack.c.bf16 %v647_v3, %v647_v3 }
 0x5b7   :  { %658 = vrot.lane.b32.xlu0 %v656_v4, %s3115_s0 }
 0x5d4   :  { %v562_v6 = vpop.permute.xlu0 %561 }
 0x5d5   :  { %v563_v8 = vmul.f32 %v562_v6, %v560_v1 }
 0x5d7   :  { %566 = vrot.lane.b32.xlu1 %v563_v8, %s3115_s0 }
 0x627   :  { %v650_v9 = vpop.permute.xlu1 %649 }
 0x628   :  { %v652_v10 = vsel %vm323_vm6, %v650_v9, 0.0 }
 0x629   :  { %653 = vadd.xlane.f32.xlu0 %v652_v10  ;;  %v659_v13 = vpop.permute.xlu0 %658 }
 0x62a   :  { %v661_v16 = vsel %vm323_vm6, %v659_v13, 0.0 }
 0x62b   :  { %662 = vadd.xlane.f32.xlu1 %v661_v16 }
 0x649   :  { %v567_v20 = vpop.permute.xlu1 %566 }
 0x64a   :  { %v3379_v22 = vadd.f32 %v567_v20, %v564_v18 }
 0x64c   :  { %2785 = vtanh.f32 %v3379_v22 }
 0x659   :  { %v2786_v24 = vpop.eup %2785 }
 0x65a   :  { %572 = vrot.lane.b32.xlu0 %v2786_v24, %s3105_s24 }
 0x6b2   :  { %v654_v25 = vpop.xlane.xlu0 %653 }
 0x6b3   :  { %v655_v27 = vmul.f32 0.03125, %v654_v25 }
 0x6b4   :  { %v663_v28 = vpop.xlane.xlu1 %662 }
 0x6b5   :  { %v665_v29 = vmul.f32 %v655_v27, %v655_v27  ;;  %v664_v30 = vmul.f32 0.03125, %v663_v28  ;;  %v669_v33 = vsub.f32 %v647_v3, %v655_v27 }
 0x6b7   :  { %v666_v31 = vsub.f32 %v664_v30, %v665_v29 }
 0x6b9   :  { %v667_v32 = vadd.f32 1e-05, %v666_v31 }
 0x6bb   :  { %2787 = vrsqrt.f32 %v667_v32 }
 0x6c8   :  { %v2788_v34 = vpop.eup %2787 }
 0x6c9   :  { %v670_v35 = vmul.f32 %v2788_v34, %v669_v33 }
 0x6cb   :  { %v671_v36 = vmul.f32 %v670_v35, %v3341_v11 }
 0x6cc   :  { %v573_v17 = vpop.permute.xlu0 %572 }
 0x6cd   :  { %v575_v37 = vmul.f32 %v573_v17, %v560_v1  ;;  %v672_v38 = vadd.f32 %v671_v36, %v3343_v14 }
 0x6cf   :  { %v674_v40 = vpack.c.bf16 %v575_v37, %v575_v37  ;;  %v673_v41 = vpack.c.bf16 %v672_v38, %v672_v38 }
 0x6d1   :  { %722 = vrot.lane.b32.xlu0 %v673_v41, %s3115_s0  ;;  %676 = vrot.lane.b32.xlu1 %v674_v40, %s3115_s0 }
 0x6d5   :  { %794 = vrot.lane.b32.xlu1 %v792_v42, %s3115_s0 }
 0x743   :  { %v677_v43 = vpop.permute.xlu1 %676  ;;  %v723_v44 = vpop.permute.xlu0 %722 }
 0x744   :  { %2546 = vmatmul.mubr.msk.bf16.vlgmr.msra.gmra.mxu0 %vm323_vm6, %v677_v43  ;;  %2554 = vmatmul.mubr.msk.bf16.vlgmr.msra.gmra.mxu1 %vm323_vm6, %v723_v44 }
 0x745   :  { %2558 = vmatpush3.bf16.msra.mxu0 %v3247_v5  ;;  %2561 = vmatprep.mubr.msk.bf16.mxu0 %vm3113_vm0, %v3112_v0 }
 0x746   :  { %2559 = vmatprep.subr.bf16.mxu0 %v3112_v0  ;;  %2566 = vmatpush3.bf16.msra.mxu1 %v3312_v59 }
 0x747   :  { %2567 = vmatprep.subr.bf16.mxu1 %v3112_v0  ;;  %2569 = vmatprep.mubr.msk.bf16.mxu1 %vm3113_vm0, %v3112_v0  ;;  %v795_v48 = vpop.permute.xlu1 %794 }
 0x749   :  { %2560 = vmatpush3.bf16.msra.mxu0 %v3259_v7 }
 0x74a   :  { %2568 = vmatpush3.bf16.msra.mxu1 %v3320_v61  ;;  %2573 = vmatprep.subr.bf16.mxu0 %v3112_v0 }
 0x74b   :  { %2581 = vmatprep.subr.bf16.mxu1 %v3112_v0 }
 0x74c   :  { %2562 = vmatmul.mubr.msk.bf16.vlgmr.msra.gmra.mxu0 %vm323_vm6, %v795_v48 }
 0x74d   :  { %2574 = vmatpush3.bf16.msra.mxu0 %v3317_v60  ;;  %2577 = vmatprep.mubr.msk.bf16.mxu0 %vm3113_vm0, %v3112_v0 }
 0x74e   :  { %2575 = vmatprep.subr.bf16.mxu0 %v3112_v0 }
 0x751   :  { %2576 = vmatpush3.bf16.msra.mxu0 %v3328_v62 }
 0x752   :  { %2589 = vmatprep.subr.bf16.mxu0 %v3112_v0 }
 0x804   :  { %v715_v49 = vpop.f32.mrf.mxu0  ;;  %v761_v50 = vpop.f32.mrf.mxu1 }
 0x805   :  { %v762_v51 = vadd.f32 %v761_v50, %v715_v49 }
 0x806   :  { %v2547_v52 = vpop.f32.mrf.mxu0  ;;  %v2555_v53 = vpop.f32.mrf.mxu1 }
 0x807   :  { %v767_v54 = vadd.f32 %v3367_v47, %v762_v51 }
 0x808   :  { %v718_v55 = vpop.f32.mrf.mxu0  ;;  %v764_v46 = vpop.f32.mrf.mxu1 }
 0x809   :  { %v2351_v56 = vmul.f32 -1.442695, %v767_v54 }
 0x80a   :  { %v2548_v57 = vpop.f32.mrf.mxu0  ;;  %v2556_v58 = vpop.f32.mrf.mxu1 }
 0x80b   :  { %2789 = vpow2.f32 %v2351_v56 }
 0x80c   :  { %v833_v63 = vpop.f32.mrf.mxu0 }
 0x80d   :  { %v839_v1 = vadd.f32 %v833_v63, %v3276_v12 }
 0x80e   :  { %v2563_v2 = vpop.f32.mrf.mxu0 }
 0x80f   :  { %v2354_v3 = vmul.f32 -1.442695, %v839_v1 }
 0x810   :  { %v836_v4 = vpop.f32.mrf.mxu0 }
 0x811   :  { %2791 = vpow2.f32 %v2354_v3 }
 0x812   :  { %v2564_v6 = vpop.f32.mrf.mxu0 }
 0x818   :  { %v2790_v8 = vpop.eup %2789 }
 0x819   :  { %v771_v9 = vadd.f32 1.0, %v2790_v8 }
 0x81b   :  { %2793 = vrcp.f32 %v771_v9 }
 0x81e   :  { %v2792_v10 = vpop.eup %2791 }
 0x81f   :  { %v843_v13 = vadd.f32 1.0, %v2792_v10 }
 0x821   :  { %2795 = vrcp.f32 %v843_v13 }
 0x828   :  { %v2794_v16 = vpop.eup %2793 }
 0x829   :  { %v774_v18 = vmul.f32 2.0, %v2794_v16 }
 0x82b   :  { %v2352_v20 = vadd.f32 -1.0, %v774_v18 }
 0x82d   :  { %v776_v24 = vsel %vm3290_vm5, %v2352_v20, %v2794_v16 }
 0x82e   :  { %v2796_v25 = vpop.eup %2795  ;;  %777 = vrot.lane.b32.xlu0 %v776_v24, %s3105_s24  ;;  %v780_v33 = vmul.f32 %v776_v24, %v3379_v22 }
 0x82f   :  { %v846_v12 = vmul.f32 2.0, %v2796_v25 }
 0x831   :  { %v2355_v27 = vadd.f32 -1.0, %v846_v12 }
 0x833   :  { %v848_v28 = vsel %vm3290_vm5, %v2355_v27, %v2796_v25 }
 0x834   :  { %849 = vrot.lane.b32.xlu1 %v848_v28, %s3105_s24  ;;  %v852_v36 = vmul.f32 %v848_v28, %v3361_v45 }
 0x8a0   :  { %v778_v29 = vpop.permute.xlu0 %777 }
 0x8a1   :  { %v779_v30 = vmul.f32 %v778_v29, %v776_v24 }
 0x8a3   :  { %782 = vrot.lane.b32.xlu0 %v779_v30, %s3115_s0 }
 0x8a6   :  { %v850_v31 = vpop.permute.xlu1 %849 }
 0x8a7   :  { %v851_v32 = vmul.f32 %v850_v31, %v848_v28 }
 0x8a9   :  { %854 = vrot.lane.b32.xlu1 %v851_v32, %s3115_s0 }
 0x915   :  { %v783_v34 = vpop.permute.xlu0 %782 }
 0x916   :  { %v3420_v35 = vadd.f32 %v783_v34, %v780_v33 }
 0x918   :  { %2797 = vtanh.f32 %v3420_v35 }
 0x91b   :  { %v855_v17 = vpop.permute.xlu1 %854 }
 0x91c   :  { %v3424_v37 = vadd.f32 %v855_v17, %v852_v36 }
 0x91e   :  { %2799 = vtanh.f32 %v3424_v37 }
 0x925   :  { %v2798_v38 = vpop.eup %2797 }
 0x926   :  { %788 = vrot.lane.b32.xlu0 %v2798_v38, %s3105_s24 }
 0x92b   :  { %v2800_v40 = vpop.eup %2799 }
 0x92c   :  { %860 = vrot.lane.b32.xlu1 %v2800_v40, %s3105_s24 }
 0x998   :  { %v789_v41 = vpop.permute.xlu0 %788 }
 0x999   :  { %v791_v22 = vmul.f32 %v789_v41, %v776_v24 }
 0x99b   :  { %v890_v42 = vpack.c.bf16 %v791_v22, %v791_v22 }
 0x99d   :  { %892 = vrot.lane.b32.xlu0 %v890_v42, %s3115_s0 }
 0x99e   :  { %v861_v43 = vpop.permute.xlu1 %860 }
 0x99f   :  { %v863_v44 = vmul.f32 %v861_v43, %v848_v28 }
 0x9a1   :  { %865 = vrot.lane.b32.xlu1 %v863_v44, %s3115_s0  ;;  %v872_v45 = vmul.f32 %v863_v44, %v863_v44  ;;  %v1008_v48 = vpack.c.bf16 %v863_v44, %v863_v44 }
 0x9a3   :  { %874 = vrot.lane.b32.xlu0 %v872_v45, %s3115_s0 }
 0x9a5   :  { %1010 = vrot.lane.b32.xlu1 %v1008_v48, %s3115_s0 }
 0xa0f   :  { %v893_v49 = vpop.permute.xlu0 %892 }
 0xa10   :  { %2570 = vmatmul.mubr.msk.bf16.vlgmr.msra.gmra.mxu1 %vm323_vm6, %v893_v49 }
 0xa11   :  { %2582 = vmatpush3.bf16.msra.mxu1 %v3247_v5  ;;  %2585 = vmatprep.mubr.msk.bf16.mxu1 %vm3113_vm0, %v3112_v0 }
 0xa12   :  { %2583 = vmatprep.subr.bf16.mxu1 %v3112_v0 }
 0xa13   :  { %v866_v50 = vpop.permute.xlu1 %865 }
 0xa14   :  { %v868_v51 = vsel %vm323_vm6, %v866_v50, 0.0 }
 0xa15   :  { %869 = vadd.xlane.f32.xlu0 %v868_v51  ;;  %2584 = vmatpush3.bf16.msra.mxu1 %v3259_v7  ;;  %v875_v52 = vpop.permute.xlu0 %874 }
 0xa16   :  { %v877_v53 = vsel %vm323_vm6, %v875_v52, 0.0  ;;  %2597 = vmatprep.subr.bf16.mxu1 %v3112_v0 }
 0xa17   :  { %v1011_v54 = vpop.permute.xlu1 %1010  ;;  %878 = vadd.xlane.f32.xlu1 %v877_v53 }
 0xa18   :  { %2586 = vmatmul.mubr.msk.bf16.vlgmr.msra.gmra.mxu1 %vm323_vm6, %v1011_v54 }
 0xa19   :  { %2598 = vmatpush3.bf16.msra.mxu1 %v3317_v60  ;;  %2601 = vmatprep.mubr.msk.bf16.mxu1 %vm3113_vm0, %v3112_v0 }
 0xa1a   :  { %2599 = vmatprep.subr.bf16.mxu1 %v3112_v0 }
 0xa1d   :  { %2600 = vmatpush3.bf16.msra.mxu1 %v3328_v62 }
 0xa1e   :  { %2613 = vmatprep.subr.bf16.mxu1 %v3112_v0 }
 0xa9e   :  { %v870_v55 = vpop.xlane.xlu0 %869 }
 0xa9f   :  { %v871_v46 = vmul.f32 0.03125, %v870_v55 }
 0xaa0   :  { %v879_v56 = vpop.xlane.xlu1 %878 }
 0xaa1   :  { %v881_v57 = vmul.f32 %v871_v46, %v871_v46  ;;  %v880_v58 = vmul.f32 0.03125, %v879_v56  ;;  %v885_v2 = vsub.f32 %v863_v44, %v871_v46 }
 0xaa3   :  { %v882_v63 = vsub.f32 %v880_v58, %v881_v57 }
 0xaa5   :  { %v883_v1 = vadd.f32 1e-05, %v882_v63 }
 0xaa7   :  { %2801 = vrsqrt.f32 %v883_v1 }
 0xab4   :  { %v2802_v3 = vpop.eup %2801 }
 0xab5   :  { %v886_v4 = vmul.f32 %v2802_v3, %v885_v2 }
 0xab7   :  { %v887_v6 = vmul.f32 %v886_v4, %v3341_v11 }
 0xab9   :  { %v888_v8 = vadd.f32 %v887_v6, %v3343_v14 }
 0xabb   :  { %v889_v9 = vpack.c.bf16 %v888_v8, %v888_v8 }
 0xabd   :  { %938 = vrot.lane.b32.xlu0 %v889_v9, %s3115_s0 }
 0xad0   :  { %v931_v10 = vpop.f32.mrf.mxu1 }
 0xad2   :  { %v2571_v13 = vpop.f32.mrf.mxu1 }
 0xad4   :  { %v934_v16 = vpop.f32.mrf.mxu1 }
 0xad6   :  { %v2572_v18 = vpop.f32.mrf.mxu1 }
 0xad8   :  { %v1049_v20 = vpop.f32.mrf.mxu1 }
 0xad9   :  { %v1055_v24 = vadd.f32 %v1049_v20, %v3278_v15 }
 0xada   :  { %v2587_v25 = vpop.f32.mrf.mxu1 }
 0xadb   :  { %v2361_v12 = vmul.f32 -1.442695, %v1055_v24 }
 0xadc   :  { %v1052_v27 = vpop.f32.mrf.mxu1 }
 0xadd   :  { %2803 = vpow2.f32 %v2361_v12 }
 0xade   :  { %v2588_v28 = vpop.f32.mrf.mxu1 }
 0xaea   :  { %v2804_v29 = vpop.eup %2803 }
 0xaeb   :  { %v1059_v30 = vadd.f32 1.0, %v2804_v29 }
 0xaed   :  { %2805 = vrcp.f32 %v1059_v30 }
 0xafa   :  { %v2806_v31 = vpop.eup %2805 }
 0xafb   :  { %v1062_v32 = vmul.f32 2.0, %v2806_v31 }
 0xafd   :  { %v2362_v33 = vadd.f32 -1.0, %v1062_v32 }
 0xaff   :  { %v1064_v34 = vsel %vm3290_vm5, %v2362_v33, %v2806_v31 }
 0xb00   :  { %1065 = vrot.lane.b32.xlu1 %v1064_v34, %s3105_s24  ;;  %v1068_v38 = vmul.f32 %v1064_v34, %v3424_v37 }
 0xb2f   :  { %v939_v36 = vpop.permute.xlu0 %938 }
 0xb30   :  { %2578 = vmatmul.mubr.msk.bf16.vlgmr.msra.gmra.mxu0 %vm323_vm6, %v939_v36 }
 0xb31   :  { %2590 = vmatpush3.bf16.msra.mxu0 %v3312_v59  ;;  %2593 = vmatprep.mubr.msk.bf16.mxu0 %vm3113_vm0, %v3112_v0 }
 0xb32   :  { %2591 = vmatprep.subr.bf16.mxu0 %v3112_v0 }
 0xb35   :  { %2592 = vmatpush3.bf16.msra.mxu0 %v3320_v61 }
 0xb36   :  { %2605 = vmatprep.subr.bf16.mxu0 %v3112_v0 }
 0xb72   :  { %v1066_v15 = vpop.permute.xlu1 %1065 }
 0xb73   :  { %v1067_v17 = vmul.f32 %v1066_v15, %v1064_v34 }
 0xb75   :  { %1070 = vrot.lane.b32.xlu0 %v1067_v17, %s3115_s0 }
 0xbe7   :  { %v1071_v40 = vpop.permute.xlu0 %1070 }
 0xbe8   :  { %v3465_v41 = vadd.f32 %v1071_v40, %v1068_v38 }
 0xbea   :  { %2807 = vtanh.f32 %v3465_v41 }
 0xbf0   :  { %v977_v22 = vpop.f32.mrf.mxu0 }
 0xbf1   :  { %v978_v42 = vadd.f32 %v977_v22, %v931_v10 }
 0xbf2   :  { %v2579_v43 = vpop.f32.mrf.mxu0 }
 0xbf3   :  { %v983_v44 = vadd.f32 %v3367_v47, %v978_v42 }
 0xbf4   :  { %v980_v45 = vpop.f32.mrf.mxu0 }
 0xbf5   :  { %v2358_v48 = vmul.f32 -1.442695, %v983_v44 }
 0xbf6   :  { %v2580_v49 = vpop.f32.mrf.mxu0 }
 0xbf7   :  { %v2808_v50 = vpop.eup %2807  ;;  %2809 = vpow2.f32 %v2358_v48 }
 0xbf8   :  { %1076 = vrot.lane.b32.xlu1 %v2808_v50, %s3105_s24 }
 0xc04   :  { %v2810_v51 = vpop.eup %2809 }
 0xc05   :  { %v987_v52 = vadd.f32 1.0, %v2810_v51 }
 0xc07   :  { %2811 = vrcp.f32 %v987_v52 }
 0xc14   :  { %v2812_v37 = vpop.eup %2811 }
 0xc15   :  { %v990_v53 = vmul.f32 2.0, %v2812_v37 }
 0xc17   :  { %v2359_v54 = vadd.f32 -1.0, %v990_v53 }
 0xc19   :  { %v992_v55 = vsel %vm3290_vm5, %v2359_v54, %v2812_v37 }
 0xc1a   :  { %993 = vrot.lane.b32.xlu0 %v992_v55, %s3105_s24  ;;  %v996_v6 = vmul.f32 %v992_v55, %v3420_v35 }
 0xc6a   :  { %v1077_v46 = vpop.permute.xlu1 %1076 }
 0xc6b   :  { %v1079_v56 = vmul.f32 %v1077_v46, %v1064_v34 }
 0xc6d   :  { %1081 = vrot.lane.b32.xlu1 %v1079_v56, %s3115_s0  ;;  %v1088_v57 = vmul.f32 %v1079_v56, %v1079_v56  ;;  %v1224_v36 = vpack.c.bf16 %v1079_v56, %v1079_v56 }
 0xc6f   :  { %1090 = vrot.lane.b32.xlu0 %v1088_v57, %s3115_s0 }
 0xc8c   :  { %v994_v58 = vpop.permute.xlu0 %993 }
 0xc8d   :  { %v995_v63 = vmul.f32 %v994_v58, %v992_v55 }
 0xc8f   :  { %998 = vrot.lane.b32.xlu1 %v995_v63, %s3115_s0 }
 0xcdf   :  { %v1082_v1 = vpop.permute.xlu1 %1081 }
 0xce0   :  { %v1084_v2 = vsel %vm323_vm6, %v1082_v1, 0.0 }
 0xce1   :  { %1085 = vadd.xlane.f32.xlu0 %v1084_v2  ;;  %v1091_v3 = vpop.permute.xlu0 %1090 }
 0xce2   :  { %v1093_v4 = vsel %vm323_vm6, %v1091_v3, 0.0 }
 0xce3   :  { %1094 = vadd.xlane.f32.xlu1 %v1093_v4 }
 0xd01   :  { %v999_v8 = vpop.permute.xlu1 %998 }
 0xd02   :  { %v3479_v9 = vadd.f32 %v999_v8, %v996_v6 }
 0xd04   :  { %2813 = vtanh.f32 %v3479_v9 }
 0xd11   :  { %v2814_v10 = vpop.eup %2813 }
 0xd12   :  { %1004 = vrot.lane.b32.xlu0 %v2814_v10, %s3105_s24 }
 0xd6a   :  { %v1086_v13 = vpop.xlane.xlu0 %1085 }
 0xd6b   :  { %v1087_v16 = vmul.f32 0.03125, %v1086_v13 }
 0xd6c   :  { %v1095_v18 = vpop.xlane.xlu1 %1094 }
 0xd6d   :  { %v1097_v20 = vmul.f32 %v1087_v16, %v1087_v16  ;;  %v1096_v24 = vmul.f32 0.03125, %v1095_v18  ;;  %v1101_v27 = vsub.f32 %v1079_v56, %v1087_v16 }
 0xd6f   :  { %v1098_v25 = vsub.f32 %v1096_v24, %v1097_v20 }
 0xd71   :  { %v1099_v12 = vadd.f32 1e-05, %v1098_v25 }
 0xd73   :  { %2815 = vrsqrt.f32 %v1099_v12 }
 0xd80   :  { %v2816_v28 = vpop.eup %2815 }
 0xd81   :  { %v1102_v29 = vmul.f32 %v2816_v28, %v1101_v27 }
 0xd83   :  { %v1103_v35 = vmul.f32 %v1102_v29, %v3341_v11 }
 0xd84   :  { %v1005_v30 = vpop.permute.xlu0 %1004 }
 0xd85   :  { %v1007_v31 = vmul.f32 %v1005_v30, %v992_v55  ;;  %v1104_v32 = vadd.f32 %v1103_v35, %v3343_v14 }
 0xd87   :  { %v1106_v33 = vpack.c.bf16 %v1007_v31, %v1007_v31  ;;  %v1105_v34 = vpack.c.bf16 %v1104_v32, %v1104_v32 }
 0xd89   :  { %1154 = vrot.lane.b32.xlu0 %v1105_v34, %s3115_s0  ;;  %1108 = vrot.lane.b32.xlu1 %v1106_v33, %s3115_s0 }
 0xd8d   :  { %1226 = vrot.lane.b32.xlu1 %v1224_v36, %s3115_s0 }
 0xdfb   :  { %v1109_v15 = vpop.permute.xlu1 %1108  ;;  %v1155_v17 = vpop.permute.xlu0 %1154 }
 0xdfc   :  { %2594 = vmatmul.mubr.msk.bf16.vlgmr.msra.gmra.mxu0 %vm323_vm6, %v1109_v15  ;;  %2602 = vmatmul.mubr.msk.bf16.vlgmr.msra.gmra.mxu1 %vm323_vm6, %v1155_v17  ;;  %v3537_v15 = vld [vmem:[%s3767_s2 + $0x8] sm:$0xff]  }
 0xdfd   :  { %2606 = vmatpush3.bf16.msra.mxu0 %v3247_v5  ;;  %2609 = vmatprep.mubr.msk.bf16.mxu0 %vm3113_vm0, %v3112_v0 }
 0xdfe   :  { %2607 = vmatprep.subr.bf16.mxu0 %v3112_v0  ;;  %2614 = vmatpush3.bf16.msra.mxu1 %v3312_v59 }
 0xdff   :  { %2615 = vmatprep.subr.bf16.mxu1 %v3112_v0  ;;  %2617 = vmatprep.mubr.msk.bf16.mxu1 %vm3113_vm0, %v3112_v0  ;;  %v1227_v38 = vpop.permute.xlu1 %1226 }
 0xe01   :  { %2608 = vmatpush3.bf16.msra.mxu0 %v3259_v7 }
 0xe02   :  { %2616 = vmatpush3.bf16.msra.mxu1 %v3320_v61  ;;  %2621 = vmatprep.subr.bf16.mxu0 %v3112_v0 }
 0xe03   :  { %2629 = vmatprep.subr.bf16.mxu1 %v3112_v0 }
 0xe04   :  { %2610 = vmatmul.mubr.msk.bf16.vlgmr.msra.gmra.mxu0 %vm323_vm6, %v1227_v38 }
 0xe05   :  { %2622 = vmatpush3.bf16.msra.mxu0 %v3317_v60  ;;  %2625 = vmatprep.mubr.msk.bf16.mxu0 %vm3113_vm0, %v3112_v0 }
 0xe06   :  { %2623 = vmatprep.subr.bf16.mxu0 %v3112_v0 }
 0xe09   :  { %2624 = vmatpush3.bf16.msra.mxu0 %v3328_v62 }
 0xe0a   :  { %2637 = vmatprep.subr.bf16.mxu0 %v3112_v0 }
 0xebc   :  { %v1147_v5 = vpop.f32.mrf.mxu0  ;;  %v1193_v7 = vpop.f32.mrf.mxu1 }
 0xebd   :  { %v1194_v40 = vadd.f32 %v1193_v7, %v1147_v5  ;;  %v3547_v5 = vld [vmem:[%s3767_s2] sm:$0xff]  }
 0xebe   :  { %v2595_v22 = vpop.f32.mrf.mxu0  ;;  %v2603_v42 = vpop.f32.mrf.mxu1 }
 0xebf   :  { %v1199_v43 = vadd.f32 %v3367_v47, %v1194_v40 }
 0xec0   :  { %v1150_v44 = vpop.f32.mrf.mxu0  ;;  %v1196_v45 = vpop.f32.mrf.mxu1 }
 0xec1   :  { %v2365_v48 = vmul.f32 -1.442695, %v1199_v43 }
 0xec2   :  { %v2596_v49 = vpop.f32.mrf.mxu0  ;;  %v2604_v50 = vpop.f32.mrf.mxu1 }
 0xec3   :  { %2817 = vpow2.f32 %v2365_v48 }
 0xec4   :  { %v1265_v51 = vpop.f32.mrf.mxu0 }
 0xec5   :  { %v1271_v52 = vadd.f32 %v1265_v51, %v3284_v21 }
 0xec6   :  { %v2611_v37 = vpop.f32.mrf.mxu0 }
 0xec7   :  { %v2368_v53 = vmul.f32 -1.442695, %v1271_v52 }
 0xec8   :  { %v1268_v54 = vpop.f32.mrf.mxu0 }
 0xec9   :  { %2819 = vpow2.f32 %v2368_v53 }
 0xeca   :  { %v2612_v55 = vpop.f32.mrf.mxu0 }
 0xed0   :  { %v2818_v46 = vpop.eup %2817 }
 0xed1   :  { %v1203_v56 = vadd.f32 1.0, %v2818_v46 }
 0xed3   :  { %2821 = vrcp.f32 %v1203_v56 }
 0xed6   :  { %v2820_v57 = vpop.eup %2819 }
 0xed7   :  { %v1275_v58 = vadd.f32 1.0, %v2820_v57 }
 0xed9   :  { %2823 = vrcp.f32 %v1275_v58 }
 0xee0   :  { %v2822_v63 = vpop.eup %2821 }
 0xee1   :  { %v1206_v1 = vmul.f32 2.0, %v2822_v63 }
 0xee3   :  { %v2366_v2 = vadd.f32 -1.0, %v1206_v1 }
 0xee5   :  { %v1208_v3 = vsel %vm3290_vm5, %v2366_v2, %v2822_v63 }
 0xee6   :  { %v2824_v4 = vpop.eup %2823  ;;  %1209 = vrot.lane.b32.xlu0 %v1208_v3, %s3105_s24  ;;  %v1212_v20 = vmul.f32 %v1208_v3, %v3479_v9 }
 0xee7   :  { %v1278_v21 = vmul.f32 2.0, %v2824_v4 }
 0xee9   :  { %v2369_v6 = vadd.f32 -1.0, %v1278_v21 }
 0xeeb   :  { %v1280_v8 = vsel %vm3290_vm5, %v2369_v6, %v2824_v4 }
 0xeec   :  { %1281 = vrot.lane.b32.xlu1 %v1280_v8, %s3105_s24  ;;  %v1284_v12 = vmul.f32 %v1280_v8, %v3465_v41 }
 0xf58   :  { %v1210_v10 = vpop.permute.xlu0 %1209 }
 0xf59   :  { %v1211_v13 = vmul.f32 %v1210_v10, %v1208_v3 }
 0xf5b   :  { %1214 = vrot.lane.b32.xlu0 %v1211_v13, %s3115_s0 }
 0xf5e   :  { %v1282_v16 = vpop.permute.xlu1 %1281 }
 0xf5f   :  { %v1283_v18 = vmul.f32 %v1282_v16, %v1280_v8 }
 0xf61   :  { %1286 = vrot.lane.b32.xlu1 %v1283_v18, %s3115_s0 }
 0xfcd   :  { %v1215_v24 = vpop.permute.xlu0 %1214 }
 0xfce   :  { %v3520_v25 = vadd.f32 %v1215_v24, %v1212_v20 }
 0xfd0   :  { %2825 = vtanh.f32 %v3520_v25 }
 0xfd3   :  { %v1287_v27 = vpop.permute.xlu1 %1286 }
 0xfd4   :  { %v3524_v28 = vadd.f32 %v1287_v27, %v1284_v12 }
 0xfd6   :  { %2827 = vtanh.f32 %v3524_v28 }
 0xfdd   :  { %v2826_v29 = vpop.eup %2825 }
 0xfde   :  { %1220 = vrot.lane.b32.xlu0 %v2826_v29, %s3105_s24 }
 0xfe3   :  { %v2828_v35 = vpop.eup %2827 }
 0xfe4   :  { %1292 = vrot.lane.b32.xlu1 %v2828_v35, %s3105_s24 }
0x1050   :  { %v1221_v30 = vpop.permute.xlu0 %1220 }
0x1051   :  { %v1223_v9 = vmul.f32 %v1221_v30, %v1208_v3 }
0x1053   :  { %v1322_v31 = vpack.c.bf16 %v1223_v9, %v1223_v9 }
0x1055   :  { %1324 = vrot.lane.b32.xlu0 %v1322_v31, %s3115_s0 }
0x1056   :  { %v1293_v32 = vpop.permute.xlu1 %1292 }
0x1057   :  { %v1295_v33 = vmul.f32 %v1293_v32, %v1280_v8 }
0x1059   :  { %1297 = vrot.lane.b32.xlu1 %v1295_v33, %s3115_s0  ;;  %v1304_v41 = vmul.f32 %v1295_v33, %v1295_v33  ;;  %v1440_v34 = vpack.c.bf16 %v1295_v33, %v1295_v33 }
0x105b   :  { %1306 = vrot.lane.b32.xlu0 %v1304_v41, %s3115_s0 }
0x105d   :  { %1442 = vrot.lane.b32.xlu1 %v1440_v34, %s3115_s0 }
0x10c7   :  { %v1325_v36 = vpop.permute.xlu0 %1324 }
0x10c8   :  { %2618 = vmatmul.mubr.msk.bf16.vlgmr.msra.gmra.mxu1 %vm323_vm6, %v1325_v36 }
0x10c9   :  { %2630 = vmatpush3.bf16.msra.mxu1 %v3537_v15  ;;  %2633 = vmatprep.mubr.msk.bf16.mxu1 %vm3113_vm0, %v3112_v0 }
0x10ca   :  { %2631 = vmatprep.subr.bf16.mxu1 %v3112_v0 }
0x10cb   :  { %v1298_v17 = vpop.permute.xlu1 %1297 }
0x10cc   :  { %v1300_v38 = vsel %vm323_vm6, %v1298_v17, 0.0 }
0x10cd   :  { %1301 = vadd.xlane.f32.xlu0 %v1300_v38  ;;  %2632 = vmatpush3.bf16.msra.mxu1 %v3547_v5  ;;  %v1307_v7 = vpop.permute.xlu0 %1306 }
0x10ce   :  { %v1309_v40 = vsel %vm323_vm6, %v1307_v7, 0.0  ;;  %2645 = vmatprep.subr.bf16.mxu1 %v3112_v0 }
0x10cf   :  { %v1443_v22 = vpop.permute.xlu1 %1442  ;;  %1310 = vadd.xlane.f32.xlu1 %v1309_v40 }
0x10d0   :  { %2634 = vmatmul.mubr.msk.bf16.vlgmr.msra.gmra.mxu1 %vm323_vm6, %v1443_v22 }
0x10d1   :  { %2646 = vmatpush3.bf16.msra.mxu1 %v3317_v60  ;;  %2649 = vmatprep.mubr.msk.bf16.mxu1 %vm3113_vm0, %v3112_v0 }
0x10d2   :  { %2647 = vmatprep.subr.bf16.mxu1 %v3112_v0 }
0x10d5   :  { %2648 = vmatpush3.bf16.msra.mxu1 %v3328_v62 }
0x10d6   :  { %2661 = vmatprep.subr.bf16.mxu1 %v3112_v0 }
0x1156   :  { %v1302_v42 = vpop.xlane.xlu0 %1301 }
0x1157   :  { %v1303_v43 = vmul.f32 0.03125, %v1302_v42 }
0x1158   :  { %v1311_v44 = vpop.xlane.xlu1 %1310 }
0x1159   :  { %v1313_v45 = vmul.f32 %v1303_v43, %v1303_v43  ;;  %v1312_v48 = vmul.f32 0.03125, %v1311_v44  ;;  %v1317_v51 = vsub.f32 %v1295_v33, %v1303_v43 }
0x115b   :  { %v1314_v49 = vsub.f32 %v1312_v48, %v1313_v45 }
0x115d   :  { %v1315_v50 = vadd.f32 1e-05, %v1314_v49 }
0x115f   :  { %2829 = vrsqrt.f32 %v1315_v50 }
0x116c   :  { %v2830_v52 = vpop.eup %2829 }
0x116d   :  { %v1318_v60 = vmul.f32 %v2830_v52, %v1317_v51 }
0x116f   :  { %v1319_v37 = vmul.f32 %v1318_v60, %v3341_v11 }
0x1171   :  { %v1320_v53 = vadd.f32 %v1319_v37, %v3343_v14 }
0x1173   :  { %v1321_v54 = vpack.c.bf16 %v1320_v53, %v1320_v53 }
0x1175   :  { %1370 = vrot.lane.b32.xlu0 %v1321_v54, %s3115_s0 }
0x1188   :  { %v1363_v62 = vpop.f32.mrf.mxu1 }
0x118a   :  { %v2619_v55 = vpop.f32.mrf.mxu1 }
0x118c   :  { %v1366_v46 = vpop.f32.mrf.mxu1 }
0x118e   :  { %v2620_v56 = vpop.f32.mrf.mxu1 }
0x1190   :  { %v1481_v57 = vpop.f32.mrf.mxu1 }
0x1191   :  { %v1487_v58 = vadd.f32 %v1481_v57, %v3288_v26 }
0x1192   :  { %v2635_v63 = vpop.f32.mrf.mxu1 }
0x1193   :  { %v2375_v1 = vmul.f32 -1.442695, %v1487_v58 }
0x1194   :  { %v1484_v2 = vpop.f32.mrf.mxu1 }
0x1195   :  { %2831 = vpow2.f32 %v2375_v1 }
0x1196   :  { %v2636_v3 = vpop.f32.mrf.mxu1 }
0x11a2   :  { %v2832_v4 = vpop.eup %2831 }
0x11a3   :  { %v1491_v21 = vadd.f32 1.0, %v2832_v4 }
0x11a5   :  { %2833 = vrcp.f32 %v1491_v21 }
0x11b2   :  { %v2834_v6 = vpop.eup %2833 }
0x11b3   :  { %v1494_v8 = vmul.f32 2.0, %v2834_v6 }
0x11b5   :  { %v2376_v10 = vadd.f32 -1.0, %v1494_v8  ;;  %v3604_v8 = vld [vmem:[#allocation9 + $0x8] sm:$0xff]  }
0x11b7   :  { %v1496_v13 = vsel %vm3290_vm5, %v2376_v10, %v2834_v6  ;;  %v3611_v10 = vld [vmem:[#allocation9] sm:$0xff]  }
0x11b8   :  { %1497 = vrot.lane.b32.xlu1 %v1496_v13, %s3105_s24  ;;  %v1500_v20 = vmul.f32 %v1496_v13, %v3524_v28 }
0x11e7   :  { %v1371_v16 = vpop.permute.xlu0 %1370 }
0x11e8   :  { %2626 = vmatmul.mubr.msk.bf16.vlgmr.msra.gmra.mxu0 %vm323_vm6, %v1371_v16  ;;  %v3620_v16 = vld [vmem:[%s3771_s6 + $0x8] sm:$0xff]  }
0x11e9   :  { %2638 = vmatpush3.bf16.msra.mxu0 %v3312_v59  ;;  %2641 = vmatprep.mubr.msk.bf16.mxu0 %vm3113_vm0, %v3112_v0 }
0x11ea   :  { %2639 = vmatprep.subr.bf16.mxu0 %v3112_v0 }
0x11ed   :  { %2640 = vmatpush3.bf16.msra.mxu0 %v3320_v61 }
0x11ee   :  { %2653 = vmatprep.subr.bf16.mxu0 %v3112_v0 }
0x122a   :  { %v1498_v26 = vpop.permute.xlu1 %1497 }
0x122b   :  { %v1499_v18 = vmul.f32 %v1498_v26, %v1496_v13  ;;  %v3629_v26 = vld [vmem:[%s3771_s6] sm:$0xff]  }
0x122d   :  { %1502 = vrot.lane.b32.xlu0 %v1499_v18, %s3115_s0 }
0x129f   :  { %v1503_v24 = vpop.permute.xlu0 %1502 }
0x12a0   :  { %v3575_v12 = vadd.f32 %v1503_v24, %v1500_v20 }
0x12a2   :  { %2835 = vtanh.f32 %v3575_v12 }
0x12a8   :  { %v1409_v59 = vpop.f32.mrf.mxu0 }
0x12a9   :  { %v1410_v27 = vadd.f32 %v1409_v59, %v1363_v62 }
0x12aa   :  { %v2627_v29 = vpop.f32.mrf.mxu0 }
0x12ab   :  { %v1415_v35 = vadd.f32 %v3367_v47, %v1410_v27 }
0x12ac   :  { %v1412_v30 = vpop.f32.mrf.mxu0 }
0x12ad   :  { %v2372_v61 = vmul.f32 -1.442695, %v1415_v35 }
0x12ae   :  { %v2628_v9 = vpop.f32.mrf.mxu0 }
0x12af   :  { %v2836_v31 = vpop.eup %2835  ;;  %2837 = vpow2.f32 %v2372_v61 }
0x12b0   :  { %1508 = vrot.lane.b32.xlu1 %v2836_v31, %s3105_s24 }
0x12bc   :  { %v2838_v32 = vpop.eup %2837 }
0x12bd   :  { %v1419_v33 = vadd.f32 1.0, %v2838_v32 }
0x12bf   :  { %2839 = vrcp.f32 %v1419_v33 }
0x12cc   :  { %v2840_v28 = vpop.eup %2839 }
0x12cd   :  { %v1422_v41 = vmul.f32 2.0, %v2840_v28 }
0x12cf   :  { %v2373_v34 = vadd.f32 -1.0, %v1422_v41 }
0x12d1   :  { %v1424_v36 = vsel %vm3290_vm5, %v2373_v34, %v2840_v28 }
0x12d2   :  { %1425 = vrot.lane.b32.xlu0 %v1424_v36, %s3105_s24  ;;  %v1428_v48 = vmul.f32 %v1424_v36, %v3520_v25 }
0x1322   :  { %v1509_v17 = vpop.permute.xlu1 %1508 }
0x1323   :  { %v1511_v38 = vmul.f32 %v1509_v17, %v1496_v13 }
0x1325   :  { %1513 = vrot.lane.b32.xlu1 %v1511_v38, %s3115_s0  ;;  %v1520_v7 = vmul.f32 %v1511_v38, %v1511_v38  ;;  %v1656_v4 = vpack.c.bf16 %v1511_v38, %v1511_v38 }
0x1327   :  { %1522 = vrot.lane.b32.xlu0 %v1520_v7, %s3115_s0 }
0x1344   :  { %v1426_v40 = vpop.permute.xlu0 %1425 }
0x1345   :  { %v1427_v22 = vmul.f32 %v1426_v40, %v1424_v36 }
0x1347   :  { %1430 = vrot.lane.b32.xlu1 %v1427_v22, %s3115_s0 }
0x1397   :  { %v1514_v42 = vpop.permute.xlu1 %1513 }
0x1398   :  { %v1516_v43 = vsel %vm323_vm6, %v1514_v42, 0.0 }
0x1399   :  { %1517 = vadd.xlane.f32.xlu0 %v1516_v43  ;;  %v1523_v44 = vpop.permute.xlu0 %1522 }
0x139a   :  { %v1525_v45 = vsel %vm323_vm6, %v1523_v44, 0.0 }
0x139b   :  { %1526 = vadd.xlane.f32.xlu1 %v1525_v45 }
0x13b9   :  { %v1431_v49 = vpop.permute.xlu1 %1430 }
0x13ba   :  { %v3589_v50 = vadd.f32 %v1431_v49, %v1428_v48 }
0x13bc   :  { %2841 = vtanh.f32 %v3589_v50 }
0x13c9   :  { %v2842_v51 = vpop.eup %2841 }
0x13ca   :  { %1436 = vrot.lane.b32.xlu0 %v2842_v51, %s3105_s24 }
0x1422   :  { %v1518_v52 = vpop.xlane.xlu0 %1517 }
0x1423   :  { %v1519_v60 = vmul.f32 0.03125, %v1518_v52 }
0x1424   :  { %v1527_v37 = vpop.xlane.xlu1 %1526 }
0x1425   :  { %v1529_v53 = vmul.f32 %v1519_v60, %v1519_v60  ;;  %v1528_v54 = vmul.f32 0.03125, %v1527_v37  ;;  %v1533_v46 = vsub.f32 %v1511_v38, %v1519_v60 }
0x1427   :  { %v1530_v62 = vsub.f32 %v1528_v54, %v1529_v53 }
0x1429   :  { %v1531_v55 = vadd.f32 1e-05, %v1530_v62 }
0x142b   :  { %2843 = vrsqrt.f32 %v1531_v55 }
0x1438   :  { %v2844_v56 = vpop.eup %2843 }
0x1439   :  { %v1534_v57 = vmul.f32 %v2844_v56, %v1533_v46 }
0x143b   :  { %v1535_v25 = vmul.f32 %v1534_v57, %v3341_v11 }
0x143c   :  { %v1437_v58 = vpop.permute.xlu0 %1436 }
0x143d   :  { %v1439_v63 = vmul.f32 %v1437_v58, %v1424_v36  ;;  %v1536_v1 = vadd.f32 %v1535_v25, %v3343_v14 }
0x143f   :  { %v1538_v2 = vpack.c.bf16 %v1439_v63, %v1439_v63  ;;  %v1537_v3 = vpack.c.bf16 %v1536_v1, %v1536_v1 }
0x1441   :  { %1586 = vrot.lane.b32.xlu0 %v1537_v3, %s3115_s0  ;;  %1540 = vrot.lane.b32.xlu1 %v1538_v2, %s3115_s0 }
0x1445   :  { %1658 = vrot.lane.b32.xlu1 %v1656_v4, %s3115_s0 }
0x14b3   :  { %v1541_v21 = vpop.permute.xlu1 %1540  ;;  %v1587_v6 = vpop.permute.xlu0 %1586 }
0x14b4   :  { %2642 = vmatmul.mubr.msk.bf16.vlgmr.msra.gmra.mxu0 %vm323_vm6, %v1541_v21  ;;  %2650 = vmatmul.mubr.msk.bf16.vlgmr.msra.gmra.mxu1 %vm323_vm6, %v1587_v6 }
0x14b5   :  { %2654 = vmatpush3.bf16.msra.mxu0 %v3537_v15  ;;  %2657 = vmatprep.mubr.msk.bf16.mxu0 %vm3113_vm0, %v3112_v0 }
0x14b6   :  { %2655 = vmatprep.subr.bf16.mxu0 %v3112_v0  ;;  %2662 = vmatpush3.bf16.msra.mxu1 %v3604_v8 }
0x14b7   :  { %2663 = vmatprep.subr.bf16.mxu1 %v3112_v0  ;;  %2665 = vmatprep.mubr.msk.bf16.mxu1 %vm3113_vm0, %v3112_v0  ;;  %v1659_v13 = vpop.permute.xlu1 %1658 }
0x14b9   :  { %2656 = vmatpush3.bf16.msra.mxu0 %v3547_v5 }
0x14ba   :  { %2664 = vmatpush3.bf16.msra.mxu1 %v3611_v10  ;;  %2669 = vmatprep.subr.bf16.mxu0 %v3112_v0 }
0x14bb   :  { %2677 = vmatprep.subr.bf16.mxu1 %v3112_v0 }
0x14bc   :  { %2658 = vmatmul.mubr.msk.bf16.vlgmr.msra.gmra.mxu0 %vm323_vm6, %v1659_v13 }
0x14bd   :  { %2670 = vmatpush3.bf16.msra.mxu0 %v3620_v16  ;;  %2673 = vmatprep.mubr.msk.bf16.mxu0 %vm3113_vm0, %v3112_v0 }
0x14be   :  { %2671 = vmatprep.subr.bf16.mxu0 %v3112_v0 }
0x14c1   :  { %2672 = vmatpush3.bf16.msra.mxu0 %v3629_v26 }
0x14c2   :  { %2685 = vmatprep.subr.bf16.mxu0 %v3112_v0 }
0x1574   :  { %v1579_v18 = vpop.f32.mrf.mxu0  ;;  %v1625_v20 = vpop.f32.mrf.mxu1 }
0x1575   :  { %v1626_v24 = vadd.f32 %v1625_v20, %v1579_v18 }
0x1576   :  { %v2643_v59 = vpop.f32.mrf.mxu0  ;;  %v2651_v27 = vpop.f32.mrf.mxu1 }
0x1577   :  { %v1631_v29 = vadd.f32 %v3367_v47, %v1626_v24 }
0x1578   :  { %v1582_v35 = vpop.f32.mrf.mxu0  ;;  %v1628_v30 = vpop.f32.mrf.mxu1 }
0x1579   :  { %v2379_v61 = vmul.f32 -1.442695, %v1631_v29 }
0x157a   :  { %v2644_v9 = vpop.f32.mrf.mxu0  ;;  %v2652_v31 = vpop.f32.mrf.mxu1 }
0x157b   :  { %2845 = vpow2.f32 %v2379_v61 }
0x157c   :  { %v1697_v32 = vpop.f32.mrf.mxu0 }
0x157d   :  { %v1703_v33 = vadd.f32 %v1697_v32, %v3282_v19 }
0x157e   :  { %v2659_v28 = vpop.f32.mrf.mxu0 }
0x157f   :  { %v2382_v41 = vmul.f32 -1.442695, %v1703_v33 }
0x1580   :  { %v1700_v34 = vpop.f32.mrf.mxu0 }
0x1581   :  { %2847 = vpow2.f32 %v2382_v41 }
0x1582   :  { %v2660_v36 = vpop.f32.mrf.mxu0 }
0x1588   :  { %v2846_v17 = vpop.eup %2845 }
0x1589   :  { %v1635_v38 = vadd.f32 1.0, %v2846_v17 }
0x158b   :  { %2849 = vrcp.f32 %v1635_v38 }
0x158e   :  { %v2848_v7 = vpop.eup %2847 }
0x158f   :  { %v1707_v40 = vadd.f32 1.0, %v2848_v7 }
0x1591   :  { %2851 = vrcp.f32 %v1707_v40 }
0x1598   :  { %v2850_v47 = vpop.eup %2849 }
0x1599   :  { %v1638_v22 = vmul.f32 2.0, %v2850_v47 }
0x159b   :  { %v2380_v42 = vadd.f32 -1.0, %v1638_v22 }
0x159d   :  { %v1640_v43 = vsel %vm3290_vm5, %v2380_v42, %v2850_v47 }
0x159e   :  { %v2852_v44 = vpop.eup %2851  ;;  %1641 = vrot.lane.b32.xlu0 %v1640_v43, %s3105_s24  ;;  %v1644_v37 = vmul.f32 %v1640_v43, %v3589_v50 }
0x159f   :  { %v1710_v19 = vmul.f32 2.0, %v2852_v44 }
0x15a1   :  { %v2383_v45 = vadd.f32 -1.0, %v1710_v19 }
0x15a3   :  { %v1712_v48 = vsel %vm3290_vm5, %v2383_v45, %v2852_v44 }
0x15a4   :  { %1713 = vrot.lane.b32.xlu1 %v1712_v48, %s3105_s24  ;;  %v1716_v62 = vmul.f32 %v1712_v48, %v3575_v12 }
0x1610   :  { %v1642_v49 = vpop.permute.xlu0 %1641 }
0x1611   :  { %v1643_v51 = vmul.f32 %v1642_v49, %v1640_v43 }
0x1613   :  { %1646 = vrot.lane.b32.xlu0 %v1643_v51, %s3115_s0 }
0x1616   :  { %v1714_v52 = vpop.permute.xlu1 %1713 }
0x1617   :  { %v1715_v60 = vmul.f32 %v1714_v52, %v1712_v48 }
0x1619   :  { %1718 = vrot.lane.b32.xlu1 %v1715_v60, %s3115_s0 }
0x1685   :  { %v1647_v53 = vpop.permute.xlu0 %1646 }
0x1686   :  { %v3644_v54 = vadd.f32 %v1647_v53, %v1644_v37  ;;  %v3692_v37 = vld [vmem:[%s3773_s8] ss:$0 sm:$0xff] }
0x1688   :  { %2853 = vtanh.f32 %v3644_v54 }
0x168b   :  { %v1719_v55 = vpop.permute.xlu1 %1718 }
0x168c   :  { %v3648_v46 = vadd.f32 %v1719_v55, %v1716_v62 }
0x168e   :  { %2855 = vtanh.f32 %v3648_v46 }
0x1695   :  { %v2854_v56 = vpop.eup %2853 }
0x1696   :  { %1652 = vrot.lane.b32.xlu0 %v2854_v56, %s3105_s24 }
0x169b   :  { %v2856_v57 = vpop.eup %2855 }
0x169c   :  { %1724 = vrot.lane.b32.xlu1 %v2856_v57, %s3105_s24 }
0x1708   :  { %v1653_v25 = vpop.permute.xlu0 %1652 }
0x1709   :  { %v1655_v50 = vmul.f32 %v1653_v25, %v1640_v43 }
0x170b   :  { %v1754_v58 = vpack.c.bf16 %v1655_v50, %v1655_v50 }
0x170d   :  { %1756 = vrot.lane.b32.xlu0 %v1754_v58, %s3115_s0 }
0x170e   :  { %v1725_v63 = vpop.permute.xlu1 %1724 }
0x170f   :  { %v1727_v1 = vmul.f32 %v1725_v63, %v1712_v48 }
0x1711   :  { %1729 = vrot.lane.b32.xlu1 %v1727_v1, %s3115_s0  ;;  %v1736_v12 = vmul.f32 %v1727_v1, %v1727_v1  ;;  %v1872_v2 = vpack.c.bf16 %v1727_v1, %v1727_v1 }
0x1713   :  { %1738 = vrot.lane.b32.xlu0 %v1736_v12, %s3115_s0 }
0x1715   :  { %1874 = vrot.lane.b32.xlu1 %v1872_v2, %s3115_s0 }
0x177f   :  { %v1757_v3 = vpop.permute.xlu0 %1756 }
0x1780   :  { %2666 = vmatmul.mubr.msk.bf16.vlgmr.msra.gmra.mxu1 %vm323_vm6, %v1757_v3 }
0x1781   :  { %2678 = vmatpush3.bf16.msra.mxu1 %v3537_v15  ;;  %2681 = vmatprep.mubr.msk.bf16.mxu1 %vm3113_vm0, %v3112_v0 }
0x1782   :  { %2679 = vmatprep.subr.bf16.mxu1 %v3112_v0 }
0x1783   :  { %v1730_v4 = vpop.permute.xlu1 %1729 }
0x1784   :  { %v1732_v21 = vsel %vm323_vm6, %v1730_v4, 0.0 }
0x1785   :  { %1733 = vadd.xlane.f32.xlu0 %v1732_v21  ;;  %2680 = vmatpush3.bf16.msra.mxu1 %v3547_v5  ;;  %v1739_v6 = vpop.permute.xlu0 %1738 }
0x1786   :  { %v1741_v13 = vsel %vm323_vm6, %v1739_v6, 0.0  ;;  %2693 = vmatprep.subr.bf16.mxu1 %v3112_v0 }
0x1787   :  { %v1875_v18 = vpop.permute.xlu1 %1874  ;;  %1742 = vadd.xlane.f32.xlu1 %v1741_v13 }
0x1788   :  { %2682 = vmatmul.mubr.msk.bf16.vlgmr.msra.gmra.mxu1 %vm323_vm6, %v1875_v18 }
0x1789   :  { %2694 = vmatpush3.bf16.msra.mxu1 %v3620_v16  ;;  %2697 = vmatprep.mubr.msk.bf16.mxu1 %vm3113_vm0, %v3112_v0 }
0x178a   :  { %2695 = vmatprep.subr.bf16.mxu1 %v3112_v0 }
0x178d   :  { %2696 = vmatpush3.bf16.msra.mxu1 %v3629_v26 }
0x178e   :  { %2709 = vmatprep.subr.bf16.mxu1 %v3112_v0 }
0x180e   :  { %v1734_v15 = vpop.xlane.xlu0 %1733 }
0x180f   :  { %v1735_v5 = vmul.f32 0.03125, %v1734_v15 }
0x1810   :  { %v1743_v20 = vpop.xlane.xlu1 %1742 }
0x1811   :  { %v1745_v24 = vmul.f32 %v1735_v5, %v1735_v5  ;;  %v1744_v59 = vmul.f32 0.03125, %v1743_v20  ;;  %v1749_v35 = vsub.f32 %v1727_v1, %v1735_v5 }
0x1813   :  { %v1746_v27 = vsub.f32 %v1744_v59, %v1745_v24 }
0x1815   :  { %v1747_v29 = vadd.f32 1e-05, %v1746_v27 }
0x1817   :  { %2857 = vrsqrt.f32 %v1747_v29 }
0x1824   :  { %v2858_v30 = vpop.eup %2857 }
0x1825   :  { %v1750_v16 = vmul.f32 %v2858_v30, %v1749_v35 }
0x1827   :  { %v1751_v61 = vmul.f32 %v1750_v16, %v3341_v11 }
0x1829   :  { %v1752_v9 = vadd.f32 %v1751_v61, %v3343_v14 }
0x182b   :  { %v1753_v31 = vpack.c.bf16 %v1752_v9, %v1752_v9 }
0x182d   :  { %1802 = vrot.lane.b32.xlu0 %v1753_v31, %s3115_s0 }
0x1840   :  { %v1795_v26 = vpop.f32.mrf.mxu1 }
0x1842   :  { %v2667_v32 = vpop.f32.mrf.mxu1 }
0x1844   :  { %v1798_v33 = vpop.f32.mrf.mxu1 }
0x1846   :  { %v2668_v28 = vpop.f32.mrf.mxu1 }
0x1848   :  { %v1913_v41 = vpop.f32.mrf.mxu1 }
0x1849   :  { %v1919_v34 = vadd.f32 %v1913_v41, %v3286_v23 }
0x184a   :  { %v2683_v36 = vpop.f32.mrf.mxu1 }
0x184b   :  { %v2389_v17 = vmul.f32 -1.442695, %v1919_v34 }
0x184c   :  { %v1916_v38 = vpop.f32.mrf.mxu1 }
0x184d   :  { %2859 = vpow2.f32 %v2389_v17 }
0x184e   :  { %v2684_v7 = vpop.f32.mrf.mxu1 }
0x185a   :  { %v2860_v40 = vpop.eup %2859 }
0x185b   :  { %v1923_v47 = vadd.f32 1.0, %v2860_v40 }
0x185d   :  { %2861 = vrcp.f32 %v1923_v47 }
0x186a   :  { %v2862_v22 = vpop.eup %2861 }
0x186b   :  { %v1926_v42 = vmul.f32 2.0, %v2862_v22 }
0x186d   :  { %v2390_v43 = vadd.f32 -1.0, %v1926_v42 }
0x186f   :  { %v1928_v44 = vsel %vm3290_vm5, %v2390_v43, %v2862_v22 }
0x1870   :  { %1929 = vrot.lane.b32.xlu1 %v1928_v44, %s3105_s24  ;;  %v1932_v48 = vmul.f32 %v1928_v44, %v3648_v46 }
0x189f   :  { %v1803_v19 = vpop.permute.xlu0 %1802 }
0x18a0   :  { %2674 = vmatmul.mubr.msk.bf16.vlgmr.msra.gmra.mxu0 %vm323_vm6, %v1803_v19 }
0x18a1   :  { %2686 = vmatpush3.bf16.msra.mxu0 %v3604_v8  ;;  %2689 = vmatprep.mubr.msk.bf16.mxu0 %vm3113_vm0, %v3112_v0 }
0x18a2   :  { %2687 = vmatprep.subr.bf16.mxu0 %v3112_v0 }
0x18a5   :  { %2688 = vmatpush3.bf16.msra.mxu0 %v3611_v10 }
0x18a6   :  { %2701 = vmatprep.subr.bf16.mxu0 %v3112_v0 }
0x18e2   :  { %v1930_v23 = vpop.permute.xlu1 %1929 }
0x18e3   :  { %v1931_v45 = vmul.f32 %v1930_v23, %v1928_v44 }
0x18e5   :  { %1934 = vrot.lane.b32.xlu0 %v1931_v45, %s3115_s0 }
0x1957   :  { %v1935_v49 = vpop.permute.xlu0 %1934 }
0x1958   :  { %v1937_v51 = vadd.f32 %v1935_v49, %v1932_v48 }
0x195a   :  { %2863 = vtanh.f32 %v1937_v51 }
0x1960   :  { %v1841_v52 = vpop.f32.mrf.mxu0 }
0x1961   :  { %v1842_v8 = vadd.f32 %v1841_v52, %v1795_v26 }
0x1962   :  { %v2675_v60 = vpop.f32.mrf.mxu0 }
0x1963   :  { %v1847_v10 = vadd.f32 %v3692_v37, %v1842_v8 }
0x1964   :  { %v1844_v53 = vpop.f32.mrf.mxu0 }
0x1965   :  { %v2386_v62 = vmul.f32 -1.442695, %v1847_v10 }
0x1966   :  { %v2676_v55 = vpop.f32.mrf.mxu0 }
0x1967   :  { %v2864_v56 = vpop.eup %2863  ;;  %2865 = vpow2.f32 %v2386_v62 }
0x1968   :  { %1940 = vrot.lane.b32.xlu1 %v2864_v56, %s3105_s24 }
0x1974   :  { %v2866_v46 = vpop.eup %2865 }
0x1975   :  { %v1851_v57 = vadd.f32 1.0, %v2866_v46 }
0x1977   :  { %2867 = vrcp.f32 %v1851_v57 }
0x1984   :  { %v2868_v25 = vpop.eup %2867 }
0x1985   :  { %v1854_v50 = vmul.f32 2.0, %v2868_v25 }
0x1987   :  { %v2387_v58 = vadd.f32 -1.0, %v1854_v50 }
0x1989   :  { %v1856_v63 = vsel %vm3290_vm5, %v2387_v58, %v2868_v25  ;;  %v2396_v58 = vld [vmem:[#allocation12] ss:$0 sm:$0xff] }
0x198a   :  { %1857 = vrot.lane.b32.xlu0 %v1856_v63, %s3105_s24  ;;  %v1860_v15 = vmul.f32 %v1856_v63, %v3644_v54 }
0x19da   :  { %v1941_v1 = vpop.permute.xlu1 %1940 }
0x19db   :  { %v1943_v12 = vmul.f32 %v1941_v1, %v1928_v44  ;;  %v2757_v1 = vld [vmem:[#allocation13 + $0x8] sm:$0xff]  }
0x19dd   :  { %1945 = vrot.lane.b32.xlu1 %v1943_v12, %s3115_s0  ;;  %v1952_v2 = vmul.f32 %v1943_v12, %v1943_v12 }
0x19df   :  { %1954 = vrot.lane.b32.xlu0 %v1952_v2, %s3115_s0 }
0x19fc   :  { %v1858_v3 = vpop.permute.xlu0 %1857 }
0x19fd   :  { %v1859_v4 = vmul.f32 %v1858_v3, %v1856_v63 }
0x19ff   :  { %1862 = vrot.lane.b32.xlu1 %v1859_v4, %s3115_s0 }
0x1a4f   :  { %v1946_v21 = vpop.permute.xlu1 %1945 }
0x1a50   :  { %v1948_v6 = vsel %vm323_vm6, %v1946_v21, 0.0 }
0x1a51   :  { %1949 = vadd.xlane.f32.xlu0 %v1948_v6  ;;  %v1955_v13 = vpop.permute.xlu0 %1954 }
0x1a52   :  { %v1957_v18 = vsel %vm323_vm6, %v1955_v13, 0.0 }
0x1a53   :  { %1958 = vadd.xlane.f32.xlu1 %v1957_v18 }
0x1a71   :  { %v1863_v5 = vpop.permute.xlu1 %1862 }
0x1a72   :  { %v1865_v20 = vadd.f32 %v1863_v5, %v1860_v15  ;;  %v2759_v15 = vld [vmem:[%s3778_s13 + $0x38] sm:$0xff]   ;;  %v2760_v5 = vld [vmem:[%s3778_s13 + $0x30] sm:$0xff]  }
0x1a74   :  { %2869 = vtanh.f32 %v1865_v20 }
0x1a81   :  { %v2870_v24 = vpop.eup %2869 }
0x1a82   :  { %1868 = vrot.lane.b32.xlu0 %v2870_v24, %s3105_s24 }
0x1ada   :  { %v1950_v59 = vpop.xlane.xlu0 %1949 }
0x1adb   :  { %v1951_v27 = vmul.f32 0.03125, %v1950_v59 }
0x1adc   :  { %v1959_v29 = vpop.xlane.xlu1 %1958 }
0x1add   :  { %v1961_v35 = vmul.f32 %v1951_v27, %v1951_v27  ;;  %v1960_v30 = vmul.f32 0.03125, %v1959_v29  ;;  %v1965_v9 = vsub.f32 %v1943_v12, %v1951_v27  ;;  %v2758_v12 = vld [vmem:[#allocation13] sm:$0xff]  }
0x1adf   :  { %v1962_v16 = vsub.f32 %v1960_v30, %v1961_v35  ;;  %v2761_v35 = vld [vmem:[%s3778_s13 + $0x28] sm:$0xff]  }
0x1ae1   :  { %v1963_v61 = vadd.f32 1e-05, %v1962_v16 }
0x1ae3   :  { %2871 = vrsqrt.f32 %v1963_v61  ;;  %v2762_v61 = vld [vmem:[%s3778_s13 + $0x20] sm:$0xff]  }
0x1af0   :  { %v2872_v31 = vpop.eup %2871 }
0x1af1   :  { %v1966_v26 = vmul.f32 %v2872_v31, %v1965_v9  ;;  %v2763_v31 = vld [vmem:[%s3778_s13 + $0x18] sm:$0xff]  }
0x1af3   :  { %v1967_v32 = vmul.f32 %v1966_v26, %v3341_v11  ;;  %v2764_v26 = vld [vmem:[%s3778_s13 + $0x10] sm:$0xff]  }
0x1af4   :  { %v1869_v54 = vpop.permute.xlu0 %1868 }
0x1af5   :  { %v1871_v33 = vmul.f32 %v1869_v54, %v1856_v63  ;;  %v1968_v28 = vadd.f32 %v1967_v32, %v3343_v14  ;;  %v2395_v63 = vld [vmem:[#allocation10] ss:$0 sm:$0xff]  ;;  %v2765_v54 = vld [vmem:[%s3778_s13 + $0x8] sm:$0xff]  }
0x1af7   :  { %v1970_v41 = vpack.c.bf16 %v1871_v33, %v1871_v33  ;;  %v1969_v34 = vpack.c.bf16 %v1968_v28, %v1968_v28  ;;  %v2766_v33 = vld [vmem:[%s3778_s13] sm:$0xff]   ;;  %v2397_v28 = vld [vmem:[#allocation15] ss:$0 sm:$0xff] }
0x1af9   :  { %2018 = vrot.lane.b32.xlu0 %v1969_v34, %s3115_s0  ;;  %1972 = vrot.lane.b32.xlu1 %v1970_v41, %s3115_s0 }
0x1b6b   :  { %v1973_v36 = vpop.permute.xlu1 %1972  ;;  %v2019_v17 = vpop.permute.xlu0 %2018 }
0x1b6c   :  { %2690 = vmatmul.mubr.msk.bf16.vlgmr.msra.gmra.mxu0 %vm323_vm6, %v1973_v36  ;;  %2698 = vmatmul.mubr.msk.bf16.vlgmr.msra.gmra.mxu1 %vm323_vm6, %v2019_v17 }
0x1b6d   :  { %2705 = vmatprep.mubr.msk.bf16.mxu0 %vm3113_vm0, %v3112_v0  ;;  %2725 = vmatprep.mubr.msk.bf16.mxu1 %vm3113_vm0, %v3112_v0 }
0x1b6e   :  { %2702 = vmatpush3.bf16.msra.mxu0 %v2757_v1  ;;  %2710 = vmatpush3.bf16.msra.mxu1 %v2759_v15 }
0x1b6f   :  { %2703 = vmatprep.subr.bf16.mxu0 %v3112_v0  ;;  %2711 = vmatprep.subr.bf16.mxu1 %v3112_v0 }
0x1b72   :  { %2704 = vmatpush3.bf16.msra.mxu0 %v2758_v12  ;;  %2712 = vmatpush3.bf16.msra.mxu1 %v2760_v5 }
0x1b73   :  { %2713 = vmatprep.subr.bf16.mxu1 %v3112_v0 }
0x1b76   :  { %2714 = vmatpush3.bf16.msra.mxu1 %v2761_v35 }
0x1b77   :  { %2715 = vmatprep.subr.bf16.mxu1 %v3112_v0 }
0x1b7a   :  { %2716 = vmatpush3.bf16.msra.mxu1 %v2762_v61 }
0x1b7b   :  { %2717 = vmatprep.subr.bf16.mxu1 %v3112_v0 }
0x1b7e   :  { %2718 = vmatpush3.bf16.msra.mxu1 %v2763_v31 }
0x1b7f   :  { %2719 = vmatprep.subr.bf16.mxu1 %v3112_v0 }
0x1b82   :  { %2720 = vmatpush3.bf16.msra.mxu1 %v2764_v26 }
0x1b83   :  { %2721 = vmatprep.subr.bf16.mxu1 %v3112_v0 }
0x1b86   :  { %2722 = vmatpush3.bf16.msra.mxu1 %v2765_v54 }
0x1b87   :  { %2723 = vmatprep.subr.bf16.mxu1 %v3112_v0 }
0x1b8a   :  { %2724 = vmatpush3.bf16.msra.mxu1 %v2766_v33 }
0x1c2c   :  { %v2011_v11 = vpop.f32.mrf.mxu0  ;;  %v2057_v14 = vpop.f32.mrf.mxu1 }
0x1c2d   :  { %v2058_v38 = vadd.f32 %v2057_v14, %v2011_v11 }
0x1c2e   :  { %v2691_v7 = vpop.f32.mrf.mxu0  ;;  %v2699_v40 = vpop.f32.mrf.mxu1 }
0x1c2f   :  { %v2063_v47 = vadd.f32 %v3692_v37, %v2058_v38  ;;  %v2401_v7 = vld [vmem:[#allocation16] ss:$0 sm:$0xff] }
0x1c30   :  { %v2014_v22 = vpop.f32.mrf.mxu0  ;;  %v2060_v42 = vpop.f32.mrf.mxu1 }
0x1c31   :  { %v2393_v43 = vmul.f32 -1.442695, %v2063_v47 }
0x1c32   :  { %v2692_v44 = vpop.f32.mrf.mxu0  ;;  %v2700_v19 = vpop.f32.mrf.mxu1 }
0x1c33   :  { %2873 = vpow2.f32 %v2393_v43 }
0x1c40   :  { %v2874_v23 = vpop.eup %2873 }
0x1c41   :  { %v2067_v45 = vadd.f32 1.0, %v2874_v23 }
0x1c43   :  { %2875 = vrcp.f32 %v2067_v45 }
0x1c50   :  { %v2876_v48 = vpop.eup %2875 }
0x1c51   :  { %v2070_v49 = vmul.f32 2.0, %v2876_v48 }
0x1c53   :  { %v2394_v51 = vadd.f32 -1.0, %v2070_v49 }
0x1c55   :  { %v2072_v52 = vsel %vm3290_vm5, %v2394_v51, %v2876_v48 }
0x1c56   :  { %2073 = vrot.lane.b32.xlu1 %v2072_v52, %s3105_s24  ;;  %v2076_v37 = vmul.f32 %v2072_v52, %v1865_v20 }
0x1cc8   :  { %v2074_v8 = vpop.permute.xlu1 %2073 }
0x1cc9   :  { %v2075_v60 = vmul.f32 %v2074_v8, %v2072_v52 }
0x1ccb   :  { %2078 = vrot.lane.b32.xlu0 %v2075_v60, %s3115_s0 }
0x1d3d   :  { %v2079_v10 = vpop.permute.xlu0 %2078 }
0x1d3e   :  { %v2081_v53 = vadd.f32 %v2079_v10, %v2076_v37 }
0x1d40   :  { %2877 = vtanh.f32 %v2081_v53 }
0x1d4d   :  { %v2878_v62 = vpop.eup %2877 }
0x1d4e   :  { %2084 = vrot.lane.b32.xlu1 %v2878_v62, %s3105_s24 }
0x1dc0   :  { %v2085_v55 = vpop.permute.xlu1 %2084 }
0x1dc1   :  { %v2087_v56 = vmul.f32 %v2085_v55, %v2072_v52 }
0x1dc3   :  { %v2096_v46 = vmul.f32 %v2087_v56, %v2087_v56  ;;  %2089 = vrot.lane.b32.xlu0 %v2087_v56, %s3115_s0 }
0x1dc5   :  { %2098 = vrot.lane.b32.xlu1 %v2096_v46, %s3115_s0 }
0x1e35   :  { %v2090_v39 = vpop.permute.xlu0 %2089 }
0x1e36   :  { %v2092_v57 = vsel %vm323_vm6, %v2090_v39, 0.0 }
0x1e37   :  { %2093 = vadd.xlane.f32.xlu0 %v2092_v57  ;;  %v2099_v25 = vpop.permute.xlu1 %2098 }
0x1e38   :  { %v2101_v50 = vsel %vm323_vm6, %v2099_v25, 0.0 }
0x1e39   :  { %2102 = vadd.xlane.f32.xlu1 %v2101_v50 }
0x1e4a   :  { %2125 = vrot.lane.b32.xlu1 %v2396_v58, %s3116_s28 }
0x1e4d   :  { %2116 = vrot.lane.b32.xlu0 %v2395_v63, %s3116_s28 }
0x1ec0   :  { %v2094_v2 = vpop.xlane.xlu0 %2093 }
0x1ec1   :  { %v2095_v3 = vmul.f32 0.03125, %v2094_v2 }
0x1ec2   :  { %v2103_v4 = vpop.xlane.xlu1 %2102 }
0x1ec3   :  { %v2105_v21 = vmul.f32 %v2095_v3, %v2095_v3  ;;  %v2104_v6 = vmul.f32 0.03125, %v2103_v4  ;;  %v2109_v20 = vsub.f32 %v2087_v56, %v2095_v3 }
0x1ec4   :  { %v2117_v59 = vpop.permute.xlu0 %2116 }
0x1ec5   :  { %v2106_v13 = vsub.f32 %v2104_v6, %v2105_v21 }
0x1ec6   :  { %v2126_v29 = vpop.permute.xlu1 %2125 }
0x1ec7   :  { %v2107_v18 = vadd.f32 1e-05, %v2106_v13 }
0x1ec9   :  { %2879 = vrsqrt.f32 %v2107_v18 }
0x1ed6   :  { %v2880_v24 = vpop.eup %2879 }
0x1ed7   :  { %v2110_v27 = vmul.f32 %v2880_v24, %v2109_v20 }
0x1ed9   :  { %v2119_v30 = vmul.f32 %v2117_v59, %v2110_v27 }
0x1edb   :  { %v2128_v16 = vadd.f32 %v2126_v29, %v2119_v30 }
0x1edd   :  { %v2129_v9 = vpack.c.bf16 %v2128_v16, %v2128_v16 }
0x1edf   :  { %2142 = vrot.lane.b32.xlu0 %v2129_v9, %s3115_s0 }
0x1f51   :  { %v2143_v32 = vpop.permute.xlu0 %2142 }
0x1f52   :  { %2706 = vmatmul.mubr.msk.bf16.vlgmr.msra.gmra.mxu0 %vm323_vm6, %v2143_v32 }
0x2012   :  { %v2193_v41 = vpop.f32.mrf.mxu0 }
0x2013   :  { %v2194_v34 = vadd.f32 %v2397_v28, %v2193_v41 }
0x2014   :  { %v2707_v36 = vpop.f32.mrf.mxu0 }
0x2015   :  { %v2199_v17 = vmax.f32 %v2194_v34, 0.0 }
0x2016   :  { %v2196_v11 = vpop.f32.mrf.mxu0 }
0x2017   :  { %v2200_v14 = vpack.c.bf16 %v2199_v17, %v2199_v17 }
0x2018   :  { %v2708_v38 = vpop.f32.mrf.mxu0 }
0x2019   :  { %2726 = vmatmul.mubr.bf16.vlgmr.msra.gmra.mxu1 %v2200_v14 }
0x20d9   :  { %v2306_v40 = vpop.f32.mrf.mxu1 }
0x20da   :  { %v2307_v47 = vadd.f32 %v2401_v7, %v2306_v40 }
0x20db   :  { %v2727_v22 = vpop.f32.mrf.mxu1 }
0x20dc   :  { %2312 = vst [vmem:[%s3780_s15] sm:$0xff] %v2307_v47 }
0x20dd   :  { %v2309_v0 = vpop.f32.mrf.mxu1 }
0x20df   :  { %v2728_v42 = vpop.f32.mrf.mxu1 }
0x20e0   :  { %2317 = vsyncpa [#allocation3], 1 }
0x20e1   :  { %2318 = vsyncpa [#allocation5], 1 }
0x20e2   :  { %2319 = vsyncpa [#allocation8], 1 }
0x20e3   :  { %2320 = vsyncpa [#allocation11], 1 }
0x20e4   :  { %2321 = vsyncpa [#allocation14], 1 }
0x20e5   :  { %2322 = vsyncpa [#allocation17], 1 }

</bundles_post_ra>
